<compile_context>
chip_gen: v7x
topology: tpu7x:2x2x1
jax: 0.10.0
libtpu: 0.0.40
codegen_flags: <defaults>
</compile_context>

<pallas_src>
import jax
import jax.numpy as jnp
import numpy as np
from jax.experimental import pallas as pl
from jax.experimental.pallas import tpu as pltpu

LANES = 128   # pack lane width; requires 4H <= 128, 2F <= 128, O <= 128
_SUB = 8      # sublane alignment for row offsets inside the pack


def _round_up(n, m):
    return -(-n // m) * m


# ------------------------------- host-side weight folding / packing -------------------------------
def prepare_gcnn_pack(params):
    p = {k: jnp.asarray(v, jnp.float32) for k, v in params.items()}
    I = p['wih'].shape[1]
    H = p['whh'].shape[1]
    F = p['b1'].shape[0]
    O = p['fc1_b'].shape[0]
    assert 4 * H <= LANES and 2 * F <= LANES and O <= LANES

    # Fold the final fc (no nonlinearity between the head fcs and ff) into the head projections.
    ffw2 = p['ff_w'][:, 0:O].T          # (O, O)  cnn2 part of ff
    ffw1 = p['ff_w'][:, O:2 * O].T      # (O, O)  cnn1 part of ff
    W1p = p['fc1_w'].T @ ffw1                     # (F, O)
    Wap = p['fc2_w'][:, 0:F].T @ ffw2             # (F, O)
    Wbp = p['fc2_w'][:, F:2 * F].T @ ffw2         # (F, O)
    Wcp = p['fc2_w'][:, 2 * F:3 * F].T @ ffw2     # (F, O)
    btot = p['fc2_b'] @ ffw2 + p['fc1_b'] @ ffw1 + p['ff_b']   # (O,)

    # Merge the b/c conv2d branches (both (2,H) kernels act on the same flattened memory).
    wbc_t = jnp.concatenate([p['w2b'].T, p['w2c'].T], axis=1)  # (2H, 2F)
    b_bc = jnp.concatenate([p['b2b'], p['b2c']])               # (2F,)
    Wbcp = jnp.concatenate([Wbp, Wcp], axis=0)                 # (2F, O)

    segs, offs = [], {}
    cur = 0

    def put(name, a):
        nonlocal cur
        a = jnp.asarray(a, jnp.float32)
        if a.ndim == 1:
            a = a[None, :]
        a = jnp.pad(a, ((0, 0), (0, LANES - a.shape[1])))      # lane-pad to 128
        rp = _round_up(a.shape[0], _SUB)                        # 8-align row extent
        a = jnp.pad(a, ((0, rp - a.shape[0]), (0, 0)))
        offs[name] = cur
        segs.append(a)
        cur += rp

    put('wih', p['wih'].T)                                      # (I, 4H)
    put('whh', p['whh'].T)                                      # (H, 4H)
    put('b', p['b_ih'] + p['b_hh'])                             # (1, 4H)
    put('w1', p['w1'].T)                                        # (3, F)
    put('b1', p['b1'])                                          # (1, F)
    put('wa', p['w2a'].T)                                       # (H, F)
    put('b2a', p['b2a'])                                        # (1, F)
    put('wbc', wbc_t)                                           # (2H, 2F)
    put('bbc', b_bc)                                            # (1, 2F)
    # output-projection weights: pad K to LANES (activations are LANES wide, padded cols are 0)
    put('W1p', jnp.pad(W1p, ((0, LANES - F), (0, 0))))          # (128, O)
    put('Wap', jnp.pad(Wap, ((0, LANES - F), (0, 0))))          # (128, O)
    put('Wbcp', jnp.pad(Wbcp, ((0, LANES - 2 * F), (0, 0))))    # (128, O)
    put('btot', btot)                                           # (1, O)

    pack = jnp.concatenate(segs, axis=0)                        # (576, 128) for the demo shapes
    meta = dict(I=I, H=H, F=F, O=O, offs=offs)
    return pack, meta


# ------------------------------------ fused GCNN forward kernel ------------------------------------
def _make_gcnn_kernel(T, B, I, H, offs):
    def kernel(x2d_ref, pk_ref, out_ref):
        wih_t = pk_ref[offs['wih']:offs['wih'] + I, :]           # (I, 128)
        whh_t = pk_ref[offs['whh']:offs['whh'] + H, :]           # (H, 128)
        bias = pk_ref[offs['b']:offs['b'] + 1, :]                # (1, 128)

        # LSTM: hoisted input projection (one MXU pass, both biases folded), kept in vregs.
        xp = (jnp.dot(x2d_ref[...], wih_t, preferred_element_type=jnp.float32) + bias
              ).reshape(T, B, LANES)                             # (T, B, 4H<=128)

        h = jnp.zeros((B, H), jnp.float32)
        c = jnp.zeros((B, H), jnp.float32)
        # Fully unrolled serial recurrence (T is small & static); only h @ Whh^T + nonlinearity
        # on the critical path.  2 EUP pushes per step (full-vreg sigmoid + tanh), then lane picks.
        for t in range(T):
            gates = xp[t] + jnp.dot(h, whh_t, preferred_element_type=jnp.float32)  # (B, 4H)
            sg = jax.nn.sigmoid(gates)
            tg = jnp.tanh(gates)
            c = sg[:, H:2 * H] * c + sg[:, 0:H] * tg[:, 2 * H:3 * H]
            h = sg[:, 3 * H:4 * H] * jnp.tanh(c)

        mem = jnp.concatenate([h, c], axis=-1)                   # (B, 2H) = concat([h_n, c_n])

        # ---- CNN1: Conv1d(in_ch=1, out_ch=F, k=3, valid) + max-pool + ReLU ----
        w1t = pk_ref[offs['w1']:offs['w1'] + 3, :]               # (3, 128)
        b1 = pk_ref[offs['b1']:offs['b1'] + 1, :]                # (1, 128)
        L = 2 * H - 2
        conved = (mem[:, 0:L][:, :, None] * w1t[0][None, None, :]
                  + mem[:, 1:1 + L][:, :, None] * w1t[1][None, None, :]
                  + mem[:, 2:2 + L][:, :, None] * w1t[2][None, None, :])   # (B, L, 128)
        act1 = jnp.maximum(jnp.max(conved, axis=1) + b1, 0.0)    # (B, 128)

        # ---- CNN2d (1,H) kernel: one stacked matmul over [h; c] rows, max over the 2 positions ----
        wat = pk_ref[offs['wa']:offs['wa'] + H, :]               # (H, 128)
        b2a = pk_ref[offs['b2a']:offs['b2a'] + 1, :]             # (1, 128)
        hc = jnp.concatenate([h, c], axis=0)                     # (2B, H)
        phc = jnp.dot(hc, wat, preferred_element_type=jnp.float32)          # (2B, 128)
        act_a = jnp.maximum(jnp.maximum(phc[0:B, :], phc[B:2 * B, :]) + b2a, 0.0)

        # ---- CNN2d (2,H) kernels b & c merged: one matmul + ReLU ----
        wbct = pk_ref[offs['wbc']:offs['wbc'] + 2 * H, :]        # (2H, 128)
        bbc = pk_ref[offs['bbc']:offs['bbc'] + 1, :]             # (1, 128)
        act_bc = jnp.maximum(jnp.dot(mem, wbct, preferred_element_type=jnp.float32) + bbc, 0.0)

        # ---- heads -> output: final fc pre-folded into the head weights on the host ----
        W1p = pk_ref[offs['W1p']:offs['W1p'] + LANES, :]         # (128, 128)
        Wap = pk_ref[offs['Wap']:offs['Wap'] + LANES, :]         # (128, 128)
        Wbcp = pk_ref[offs['Wbcp']:offs['Wbcp'] + LANES, :]      # (128, 128)
        btot = pk_ref[offs['btot']:offs['btot'] + 1, :]          # (1, 128)

        out_ref[...] = (jnp.dot(act_a, Wap, preferred_element_type=jnp.float32)
                        + jnp.dot(act_bc, Wbcp, preferred_element_type=jnp.float32)
                        + jnp.dot(act1, W1p, preferred_element_type=jnp.float32)
                        + btot)                                  # (B, 128), cols O: are zero
    return kernel


def build_gcnn_forward(meta):
    H = meta['H']
    O = meta['O']
    offs = dict(meta['offs'])

    @jax.jit
    def fwd(text, pack):
        T, B, I = text.shape
        x2d = text.reshape(T * B, I).astype(jnp.float32)         # row t*B+b == (timestep t, batch b)
        kernel = _make_gcnn_kernel(T, B, I, H, offs)
        out_pad = pl.pallas_call(
            kernel,
            out_shape=jax.ShapeDtypeStruct((B, LANES), jnp.float32),
            in_specs=[pl.BlockSpec(memory_space=pltpu.MemorySpace.VMEM),
                      pl.BlockSpec(memory_space=pltpu.MemorySpace.VMEM)],
            out_specs=pl.BlockSpec(memory_space=pltpu.MemorySpace.VMEM),
        )(x2d, pack)
        return out_pad[:, :O]

    return fwd


# ----------------------------------- pure-JAX reference for validation -----------------------------------
def gcnn_reference(text, p):
    T, B, I = text.shape
    H = p['whh'].shape[1]

    def step(carry, x_t):
        h, c = carry
        gates = x_t @ p['wih'].T + h @ p['whh'].T + p['b_ih'] + p['b_hh']
        i = jax.nn.sigmoid(gates[:, :H])
        f = jax.nn.sigmoid(gates[:, H:2 * H])
        g = jnp.tanh(gates[:, 2 * H:3 * H])
        o = jax.nn.sigmoid(gates[:, 3 * H:])
        c = f * c + i * g
        h = o * jnp.tanh(c)
        return (h, c), None

    (h, c), _ = jax.lax.scan(step, (jnp.zeros((B, H)), jnp.zeros((B, H))), text)
    mem = jnp.concatenate([h, c], axis=-1)                  # (B, 2H)

    L = 2 * H - 2
    cols = jnp.stack([mem[:, k:k + L] for k in range(3)], axis=-1)          # (B, L, 3)
    conved = jnp.einsum('blk,fk->blf', cols, p['w1'])
    act1 = jax.nn.relu(jnp.max(conved, axis=1) + p['b1'])
    cnn1_out = act1 @ p['fc1_w'].T + p['fc1_b']

    pa = jnp.maximum(mem[:, :H] @ p['w2a'].T, mem[:, H:] @ p['w2a'].T)
    act_a = jax.nn.relu(pa + p['b2a'])
    act_b = jax.nn.relu(mem @ p['w2b'].T + p['b2b'])
    act_c = jax.nn.relu(mem @ p['w2c'].T + p['b2c'])
    cat2 = jnp.concatenate([act_a, act_b, act_c], axis=1)
    cnn2_out = cat2 @ p['fc2_w'].T + p['fc2_b']

    cat = jnp.concatenate([cnn2_out, cnn1_out], axis=1)
    return cat @ p['ff_w'].T + p['ff_b']


def init_params(key, I, H, O, F):
    ks = jax.random.split(key, 20)
    s = 0.1
    n = lambda k, shape: s * jax.random.normal(k, shape, jnp.float32)
    return {
        'wih': n(ks[0], (4 * H, I)), 'whh': n(ks[1], (4 * H, H)),
        'b_ih': n(ks[2], (4 * H,)), 'b_hh': n(ks[3], (4 * H,)),
        'w1': n(ks[4], (F, 3)), 'b1': n(ks[5], (F,)),
        'fc1_w': n(ks[6], (O, F)), 'fc1_b': n(ks[7], (O,)),
        'w2a': n(ks[8], (F, H)), 'b2a': n(ks[9], (F,)),
        'w2b': n(ks[10], (F, 2 * H)), 'b2b': n(ks[11], (F,)),
        'w2c': n(ks[12], (F, 2 * H)), 'b2c': n(ks[13], (F,)),
        'fc2_w': n(ks[14], (O, 3 * F)), 'fc2_b': n(ks[15], (O,)),
        'ff_w': n(ks[16], (O, 2 * O)), 'ff_b': n(ks[17], (O,)),
    }


if __name__ == "__main__":
    T, B, I, H, O, F = 8, 2, 16, 32, 3, 50
    key = jax.random.PRNGKey(0)
    k_x, k_p = jax.random.split(key)
    text = jax.random.normal(k_x, (T, B, I), jnp.float32)
    params = init_params(k_p, I, H, O, F)

    pack, meta = prepare_gcnn_pack(params)        # one-time host-side folding + packing
    gcnn_forward = build_gcnn_forward(meta)

    pred = gcnn_forward(text, pack)
    pred = jax.block_until_ready(pred)
    assert pred.shape == (B, O)

    ref = gcnn_reference(text, params)
    np.testing.assert_allclose(np.asarray(pred), np.asarray(ref), rtol=1e-3, atol=1e-3)
    print("KERNEL_OK")
</pallas_src>

<mosaic_0001>
module attributes {stable_mosaic.version = 11 : i64} {
  func.func @kernel(%arg0: memref<16x16xf32, #tpu.memory_space<vmem>>, %arg1: memref<576x128xf32, #tpu.memory_space<vmem>>, %arg2: memref<2x128xf32, #tpu.memory_space<vmem>>) attributes {dimension_semantics = [], scalar_prefetch = 0 : i64, scratch_operands = 0 : i64, tpu.core_type = #tpu.core_type<tc>} {
    %c0 = arith.constant 0 : index
    %c0_0 = arith.constant 0 : index
    %0 = vector.load %arg1[%c0, %c0_0] : memref<576x128xf32, #tpu.memory_space<vmem>>, vector<16x128xf32>
    %c16 = arith.constant 16 : index
    %c0_1 = arith.constant 0 : index
    %1 = vector.load %arg1[%c16, %c0_1] : memref<576x128xf32, #tpu.memory_space<vmem>>, vector<32x128xf32>
    %c48 = arith.constant 48 : index
    %c0_2 = arith.constant 0 : index
    %2 = vector.load %arg1[%c48, %c0_2] : memref<576x128xf32, #tpu.memory_space<vmem>>, vector<1x128xf32>
    %c0_3 = arith.constant 0 : index
    %c0_4 = arith.constant 0 : index
    %3 = vector.load %arg0[%c0_3, %c0_4] : memref<16x16xf32, #tpu.memory_space<vmem>>, vector<16x16xf32>
    %cst = arith.constant dense<0.000000e+00> : vector<16x128xf32>
    %4 = tpu.matmul %3, %0, %cst {dimension_numbers = #tpu.dot_dimension_numbers<[1], [0], [0], [1], [0, 0, 1, 1], [], []>} : vector<16x16xf32>, vector<16x128xf32>, vector<16x128xf32> -> vector<16x128xf32>
    %5 = vector.broadcast %2 : vector<1x128xf32> to vector<16x128xf32>
    %6 = arith.addf %4, %5 : vector<16x128xf32>
    %7 = vector.shape_cast %6 : vector<16x128xf32> to vector<8x2x128xf32>
    %cst_5 = arith.constant 0.000000e+00 : f32
    %8 = vector.broadcast %cst_5 : f32 to vector<2x32xf32>
    %cst_6 = arith.constant 0.000000e+00 : f32
    %9 = vector.broadcast %cst_6 : f32 to vector<2x32xf32>
    %10 = vector.extract_strided_slice %7 {offsets = [0, 0, 0], sizes = [1, 2, 128], strides = [1, 1, 1]} : vector<8x2x128xf32> to vector<1x2x128xf32>
    %11 = vector.shape_cast %10 : vector<1x2x128xf32> to vector<2x128xf32>
    %cst_7 = arith.constant dense<0.000000e+00> : vector<2x128xf32>
    %12 = tpu.matmul %8, %1, %cst_7 {dimension_numbers = #tpu.dot_dimension_numbers<[1], [0], [0], [1], [0, 0, 1, 1], [], []>} : vector<2x32xf32>, vector<32x128xf32>, vector<2x128xf32> -> vector<2x128xf32>
    %13 = arith.addf %11, %12 : vector<2x128xf32>
    %14 = arith.negf %13 : vector<2x128xf32>
    %15 = math.exp %14 : vector<2x128xf32>
    %cst_8 = arith.constant 1.000000e+00 : f32
    %16 = vector.broadcast %cst_8 : f32 to vector<2x128xf32>
    %17 = arith.addf %16, %15 : vector<2x128xf32>
    %18 = arith.divf %16, %17 : vector<2x128xf32>
    %19 = math.tanh %13 : vector<2x128xf32>
    %20 = vector.extract_strided_slice %18 {offsets = [0, 32], sizes = [2, 32], strides = [1, 1]} : vector<2x128xf32> to vector<2x32xf32>
    %21 = arith.mulf %20, %9 : vector<2x32xf32>
    %22 = vector.extract_strided_slice %18 {offsets = [0, 0], sizes = [2, 32], strides = [1, 1]} : vector<2x128xf32> to vector<2x32xf32>
    %23 = vector.extract_strided_slice %19 {offsets = [0, 64], sizes = [2, 32], strides = [1, 1]} : vector<2x128xf32> to vector<2x32xf32>
    %24 = arith.mulf %22, %23 : vector<2x32xf32>
    %25 = arith.addf %21, %24 : vector<2x32xf32>
    %26 = vector.extract_strided_slice %18 {offsets = [0, 96], sizes = [2, 32], strides = [1, 1]} : vector<2x128xf32> to vector<2x32xf32>
    %27 = math.tanh %25 : vector<2x32xf32>
    %28 = arith.mulf %26, %27 : vector<2x32xf32>
    %29 = vector.extract_strided_slice %7 {offsets = [1, 0, 0], sizes = [1, 2, 128], strides = [1, 1, 1]} : vector<8x2x128xf32> to vector<1x2x128xf32>
    %30 = vector.shape_cast %29 : vector<1x2x128xf32> to vector<2x128xf32>
    %cst_9 = arith.constant dense<0.000000e+00> : vector<2x128xf32>
    %31 = tpu.matmul %28, %1, %cst_9 {dimension_numbers = #tpu.dot_dimension_numbers<[1], [0], [0], [1], [0, 0, 1, 1], [], []>} : vector<2x32xf32>, vector<32x128xf32>, vector<2x128xf32> -> vector<2x128xf32>
    %32 = arith.addf %30, %31 : vector<2x128xf32>
    %33 = arith.negf %32 : vector<2x128xf32>
    %34 = math.exp %33 : vector<2x128xf32>
    %cst_10 = arith.constant 1.000000e+00 : f32
    %35 = vector.broadcast %cst_10 : f32 to vector<2x128xf32>
    %36 = arith.addf %35, %34 : vector<2x128xf32>
    %37 = arith.divf %35, %36 : vector<2x128xf32>
    %38 = math.tanh %32 : vector<2x128xf32>
    %39 = vector.extract_strided_slice %37 {offsets = [0, 32], sizes = [2, 32], strides = [1, 1]} : vector<2x128xf32> to vector<2x32xf32>
    %40 = arith.mulf %39, %25 : vector<2x32xf32>
    %41 = vector.extract_strided_slice %37 {offsets = [0, 0], sizes = [2, 32], strides = [1, 1]} : vector<2x128xf32> to vector<2x32xf32>
    %42 = vector.extract_strided_slice %38 {offsets = [0, 64], sizes = [2, 32], strides = [1, 1]} : vector<2x128xf32> to vector<2x32xf32>
    %43 = arith.mulf %41, %42 : vector<2x32xf32>
    %44 = arith.addf %40, %43 : vector<2x32xf32>
    %45 = vector.extract_strided_slice %37 {offsets = [0, 96], sizes = [2, 32], strides = [1, 1]} : vector<2x128xf32> to vector<2x32xf32>
    %46 = math.tanh %44 : vector<2x32xf32>
    %47 = arith.mulf %45, %46 : vector<2x32xf32>
    %48 = vector.extract_strided_slice %7 {offsets = [2, 0, 0], sizes = [1, 2, 128], strides = [1, 1, 1]} : vector<8x2x128xf32> to vector<1x2x128xf32>
    %49 = vector.shape_cast %48 : vector<1x2x128xf32> to vector<2x128xf32>
    %cst_11 = arith.constant dense<0.000000e+00> : vector<2x128xf32>
    %50 = tpu.matmul %47, %1, %cst_11 {dimension_numbers = #tpu.dot_dimension_numbers<[1], [0], [0], [1], [0, 0, 1, 1], [], []>} : vector<2x32xf32>, vector<32x128xf32>, vector<2x128xf32> -> vector<2x128xf32>
    %51 = arith.addf %49, %50 : vector<2x128xf32>
    %52 = arith.negf %51 : vector<2x128xf32>
    %53 = math.exp %52 : vector<2x128xf32>
    %cst_12 = arith.constant 1.000000e+00 : f32
    %54 = vector.broadcast %cst_12 : f32 to vector<2x128xf32>
    %55 = arith.addf %54, %53 : vector<2x128xf32>
    %56 = arith.divf %54, %55 : vector<2x128xf32>
    %57 = math.tanh %51 : vector<2x128xf32>
    %58 = vector.extract_strided_slice %56 {offsets = [0, 32], sizes = [2, 32], strides = [1, 1]} : vector<2x128xf32> to vector<2x32xf32>
    %59 = arith.mulf %58, %44 : vector<2x32xf32>
    %60 = vector.extract_strided_slice %56 {offsets = [0, 0], sizes = [2, 32], strides = [1, 1]} : vector<2x128xf32> to vector<2x32xf32>
    %61 = vector.extract_strided_slice %57 {offsets = [0, 64], sizes = [2, 32], strides = [1, 1]} : vector<2x128xf32> to vector<2x32xf32>
    %62 = arith.mulf %60, %61 : vector<2x32xf32>
    %63 = arith.addf %59, %62 : vector<2x32xf32>
    %64 = vector.extract_strided_slice %56 {offsets = [0, 96], sizes = [2, 32], strides = [1, 1]} : vector<2x128xf32> to vector<2x32xf32>
    %65 = math.tanh %63 : vector<2x32xf32>
    %66 = arith.mulf %64, %65 : vector<2x32xf32>
    %67 = vector.extract_strided_slice %7 {offsets = [3, 0, 0], sizes = [1, 2, 128], strides = [1, 1, 1]} : vector<8x2x128xf32> to vector<1x2x128xf32>
    %68 = vector.shape_cast %67 : vector<1x2x128xf32> to vector<2x128xf32>
    %cst_13 = arith.constant dense<0.000000e+00> : vector<2x128xf32>
    %69 = tpu.matmul %66, %1, %cst_13 {dimension_numbers = #tpu.dot_dimension_numbers<[1], [0], [0], [1], [0, 0, 1, 1], [], []>} : vector<2x32xf32>, vector<32x128xf32>, vector<2x128xf32> -> vector<2x128xf32>
    %70 = arith.addf %68, %69 : vector<2x128xf32>
    %71 = arith.negf %70 : vector<2x128xf32>
    %72 = math.exp %71 : vector<2x128xf32>
    %cst_14 = arith.constant 1.000000e+00 : f32
    %73 = vector.broadcast %cst_14 : f32 to vector<2x128xf32>
    %74 = arith.addf %73, %72 : vector<2x128xf32>
    %75 = arith.divf %73, %74 : vector<2x128xf32>
    %76 = math.tanh %70 : vector<2x128xf32>
    %77 = vector.extract_strided_slice %75 {offsets = [0, 32], sizes = [2, 32], strides = [1, 1]} : vector<2x128xf32> to vector<2x32xf32>
    %78 = arith.mulf %77, %63 : vector<2x32xf32>
    %79 = vector.extract_strided_slice %75 {offsets = [0, 0], sizes = [2, 32], strides = [1, 1]} : vector<2x128xf32> to vector<2x32xf32>
    %80 = vector.extract_strided_slice %76 {offsets = [0, 64], sizes = [2, 32], strides = [1, 1]} : vector<2x128xf32> to vector<2x32xf32>
    %81 = arith.mulf %79, %80 : vector<2x32xf32>
    %82 = arith.addf %78, %81 : vector<2x32xf32>
    %83 = vector.extract_strided_slice %75 {offsets = [0, 96], sizes = [2, 32], strides = [1, 1]} : vector<2x128xf32> to vector<2x32xf32>
    %84 = math.tanh %82 : vector<2x32xf32>
    %85 = arith.mulf %83, %84 : vector<2x32xf32>
    %86 = vector.extract_strided_slice %7 {offsets = [4, 0, 0], sizes = [1, 2, 128], strides = [1, 1, 1]} : vector<8x2x128xf32> to vector<1x2x128xf32>
    %87 = vector.shape_cast %86 : vector<1x2x128xf32> to vector<2x128xf32>
    %cst_15 = arith.constant dense<0.000000e+00> : vector<2x128xf32>
    %88 = tpu.matmul %85, %1, %cst_15 {dimension_numbers = #tpu.dot_dimension_numbers<[1], [0], [0], [1], [0, 0, 1, 1], [], []>} : vector<2x32xf32>, vector<32x128xf32>, vector<2x128xf32> -> vector<2x128xf32>
    %89 = arith.addf %87, %88 : vector<2x128xf32>
    %90 = arith.negf %89 : vector<2x128xf32>
    %91 = math.exp %90 : vector<2x128xf32>
    %cst_16 = arith.constant 1.000000e+00 : f32
    %92 = vector.broadcast %cst_16 : f32 to vector<2x128xf32>
    %93 = arith.addf %92, %91 : vector<2x128xf32>
    %94 = arith.divf %92, %93 : vector<2x128xf32>
    %95 = math.tanh %89 : vector<2x128xf32>
    %96 = vector.extract_strided_slice %94 {offsets = [0, 32], sizes = [2, 32], strides = [1, 1]} : vector<2x128xf32> to vector<2x32xf32>
    %97 = arith.mulf %96, %82 : vector<2x32xf32>
    %98 = vector.extract_strided_slice %94 {offsets = [0, 0], sizes = [2, 32], strides = [1, 1]} : vector<2x128xf32> to vector<2x32xf32>
    %99 = vector.extract_strided_slice %95 {offsets = [0, 64], sizes = [2, 32], strides = [1, 1]} : vector<2x128xf32> to vector<2x32xf32>
    %100 = arith.mulf %98, %99 : vector<2x32xf32>
    %101 = arith.addf %97, %100 : vector<2x32xf32>
    %102 = vector.extract_strided_slice %94 {offsets = [0, 96], sizes = [2, 32], strides = [1, 1]} : vector<2x128xf32> to vector<2x32xf32>
    %103 = math.tanh %101 : vector<2x32xf32>
    %104 = arith.mulf %102, %103 : vector<2x32xf32>
    %105 = vector.extract_strided_slice %7 {offsets = [5, 0, 0], sizes = [1, 2, 128], strides = [1, 1, 1]} : vector<8x2x128xf32> to vector<1x2x128xf32>
    %106 = vector.shape_cast %105 : vector<1x2x128xf32> to vector<2x128xf32>
    %cst_17 = arith.constant dense<0.000000e+00> : vector<2x128xf32>
    %107 = tpu.matmul %104, %1, %cst_17 {dimension_numbers = #tpu.dot_dimension_numbers<[1], [0], [0], [1], [0, 0, 1, 1], [], []>} : vector<2x32xf32>, vector<32x128xf32>, vector<2x128xf32> -> vector<2x128xf32>
    %108 = arith.addf %106, %107 : vector<2x128xf32>
    %109 = arith.negf %108 : vector<2x128xf32>
    %110 = math.exp %109 : vector<2x128xf32>
    %cst_18 = arith.constant 1.000000e+00 : f32
    %111 = vector.broadcast %cst_18 : f32 to vector<2x128xf32>
    %112 = arith.addf %111, %110 : vector<2x128xf32>
    %113 = arith.divf %111, %112 : vector<2x128xf32>
    %114 = math.tanh %108 : vector<2x128xf32>
    %115 = vector.extract_strided_slice %113 {offsets = [0, 32], sizes = [2, 32], strides = [1, 1]} : vector<2x128xf32> to vector<2x32xf32>
    %116 = arith.mulf %115, %101 : vector<2x32xf32>
    %117 = vector.extract_strided_slice %113 {offsets = [0, 0], sizes = [2, 32], strides = [1, 1]} : vector<2x128xf32> to vector<2x32xf32>
    %118 = vector.extract_strided_slice %114 {offsets = [0, 64], sizes = [2, 32], strides = [1, 1]} : vector<2x128xf32> to vector<2x32xf32>
    %119 = arith.mulf %117, %118 : vector<2x32xf32>
    %120 = arith.addf %116, %119 : vector<2x32xf32>
    %121 = vector.extract_strided_slice %113 {offsets = [0, 96], sizes = [2, 32], strides = [1, 1]} : vector<2x128xf32> to vector<2x32xf32>
    %122 = math.tanh %120 : vector<2x32xf32>
    %123 = arith.mulf %121, %122 : vector<2x32xf32>
    %124 = vector.extract_strided_slice %7 {offsets = [6, 0, 0], sizes = [1, 2, 128], strides = [1, 1, 1]} : vector<8x2x128xf32> to vector<1x2x128xf32>
    %125 = vector.shape_cast %124 : vector<1x2x128xf32> to vector<2x128xf32>
    %cst_19 = arith.constant dense<0.000000e+00> : vector<2x128xf32>
    %126 = tpu.matmul %123, %1, %cst_19 {dimension_numbers = #tpu.dot_dimension_numbers<[1], [0], [0], [1], [0, 0, 1, 1], [], []>} : vector<2x32xf32>, vector<32x128xf32>, vector<2x128xf32> -> vector<2x128xf32>
    %127 = arith.addf %125, %126 : vector<2x128xf32>
    %128 = arith.negf %127 : vector<2x128xf32>
    %129 = math.exp %128 : vector<2x128xf32>
    %cst_20 = arith.constant 1.000000e+00 : f32
    %130 = vector.broadcast %cst_20 : f32 to vector<2x128xf32>
    %131 = arith.addf %130, %129 : vector<2x128xf32>
    %132 = arith.divf %130, %131 : vector<2x128xf32>
    %133 = math.tanh %127 : vector<2x128xf32>
    %134 = vector.extract_strided_slice %132 {offsets = [0, 32], sizes = [2, 32], strides = [1, 1]} : vector<2x128xf32> to vector<2x32xf32>
    %135 = arith.mulf %134, %120 : vector<2x32xf32>
    %136 = vector.extract_strided_slice %132 {offsets = [0, 0], sizes = [2, 32], strides = [1, 1]} : vector<2x128xf32> to vector<2x32xf32>
    %137 = vector.extract_strided_slice %133 {offsets = [0, 64], sizes = [2, 32], strides = [1, 1]} : vector<2x128xf32> to vector<2x32xf32>
    %138 = arith.mulf %136, %137 : vector<2x32xf32>
    %139 = arith.addf %135, %138 : vector<2x32xf32>
    %140 = vector.extract_strided_slice %132 {offsets = [0, 96], sizes = [2, 32], strides = [1, 1]} : vector<2x128xf32> to vector<2x32xf32>
    %141 = math.tanh %139 : vector<2x32xf32>
    %142 = arith.mulf %140, %141 : vector<2x32xf32>
    %143 = vector.extract_strided_slice %7 {offsets = [7, 0, 0], sizes = [1, 2, 128], strides = [1, 1, 1]} : vector<8x2x128xf32> to vector<1x2x128xf32>
    %144 = vector.shape_cast %143 : vector<1x2x128xf32> to vector<2x128xf32>
    %cst_21 = arith.constant dense<0.000000e+00> : vector<2x128xf32>
    %145 = tpu.matmul %142, %1, %cst_21 {dimension_numbers = #tpu.dot_dimension_numbers<[1], [0], [0], [1], [0, 0, 1, 1], [], []>} : vector<2x32xf32>, vector<32x128xf32>, vector<2x128xf32> -> vector<2x128xf32>
    %146 = arith.addf %144, %145 : vector<2x128xf32>
    %147 = arith.negf %146 : vector<2x128xf32>
    %148 = math.exp %147 : vector<2x128xf32>
    %cst_22 = arith.constant 1.000000e+00 : f32
    %149 = vector.broadcast %cst_22 : f32 to vector<2x128xf32>
    %150 = arith.addf %149, %148 : vector<2x128xf32>
    %151 = arith.divf %149, %150 : vector<2x128xf32>
    %152 = math.tanh %146 : vector<2x128xf32>
    %153 = vector.extract_strided_slice %151 {offsets = [0, 32], sizes = [2, 32], strides = [1, 1]} : vector<2x128xf32> to vector<2x32xf32>
    %154 = arith.mulf %153, %139 : vector<2x32xf32>
    %155 = vector.extract_strided_slice %151 {offsets = [0, 0], sizes = [2, 32], strides = [1, 1]} : vector<2x128xf32> to vector<2x32xf32>
    %156 = vector.extract_strided_slice %152 {offsets = [0, 64], sizes = [2, 32], strides = [1, 1]} : vector<2x128xf32> to vector<2x32xf32>
    %157 = arith.mulf %155, %156 : vector<2x32xf32>
    %158 = arith.addf %154, %157 : vector<2x32xf32>
    %159 = vector.extract_strided_slice %151 {offsets = [0, 96], sizes = [2, 32], strides = [1, 1]} : vector<2x128xf32> to vector<2x32xf32>
    %160 = math.tanh %158 : vector<2x32xf32>
    %161 = arith.mulf %159, %160 : vector<2x32xf32>
    %162 = tpu.concatenate %161, %158 in 1 : vector<2x32xf32>, vector<2x32xf32> -> vector<2x64xf32>
    %c56 = arith.constant 56 : index
    %c0_23 = arith.constant 0 : index
    %163 = vector.load %arg1[%c56, %c0_23] : memref<576x128xf32, #tpu.memory_space<vmem>>, vector<3x128xf32>
    %c64 = arith.constant 64 : index
    %c0_24 = arith.constant 0 : index
    %164 = vector.load %arg1[%c64, %c0_24] : memref<576x128xf32, #tpu.memory_space<vmem>>, vector<1x128xf32>
    %165 = vector.extract_strided_slice %162 {offsets = [0, 0], sizes = [2, 62], strides = [1, 1]} : vector<2x64xf32> to vector<2x62xf32>
    %166 = vector.shape_cast %165 : vector<2x62xf32> to vector<2x62x1xf32>
    %167 = vector.extract_strided_slice %163 {offsets = [0, 0], sizes = [1, 128], strides = [1, 1]} : vector<3x128xf32> to vector<1x128xf32>
    %168 = vector.shape_cast %167 : vector<1x128xf32> to vector<128xf32>
    %169 = vector.shape_cast %168 : vector<128xf32> to vector<1x1x128xf32>
    %170 = vector.broadcast %166 : vector<2x62x1xf32> to vector<2x62x128xf32>
    %171 = vector.broadcast %169 : vector<1x1x128xf32> to vector<2x62x128xf32>
    %172 = arith.mulf %170, %171 : vector<2x62x128xf32>
    %173 = vector.extract_strided_slice %162 {offsets = [0, 1], sizes = [2, 62], strides = [1, 1]} : vector<2x64xf32> to vector<2x62xf32>
    %174 = vector.shape_cast %173 : vector<2x62xf32> to vector<2x62x1xf32>
    %175 = vector.extract_strided_slice %163 {offsets = [1, 0], sizes = [1, 128], strides = [1, 1]} : vector<3x128xf32> to vector<1x128xf32>
    %176 = vector.shape_cast %175 : vector<1x128xf32> to vector<128xf32>
    %177 = vector.shape_cast %176 : vector<128xf32> to vector<1x1x128xf32>
    %178 = vector.broadcast %174 : vector<2x62x1xf32> to vector<2x62x128xf32>
    %179 = vector.broadcast %177 : vector<1x1x128xf32> to vector<2x62x128xf32>
    %180 = arith.mulf %178, %179 : vector<2x62x128xf32>
    %181 = arith.addf %172, %180 : vector<2x62x128xf32>
    %182 = vector.extract_strided_slice %162 {offsets = [0, 2], sizes = [2, 62], strides = [1, 1]} : vector<2x64xf32> to vector<2x62xf32>
    %183 = vector.shape_cast %182 : vector<2x62xf32> to vector<2x62x1xf32>
    %184 = vector.extract_strided_slice %163 {offsets = [2, 0], sizes = [1, 128], strides = [1, 1]} : vector<3x128xf32> to vector<1x128xf32>
    %185 = vector.shape_cast %184 : vector<1x128xf32> to vector<128xf32>
    %186 = vector.shape_cast %185 : vector<128xf32> to vector<1x1x128xf32>
    %187 = vector.broadcast %183 : vector<2x62x1xf32> to vector<2x62x128xf32>
    %188 = vector.broadcast %186 : vector<1x1x128xf32> to vector<2x62x128xf32>
    %189 = arith.mulf %187, %188 : vector<2x62x128xf32>
    %190 = arith.addf %181, %189 : vector<2x62x128xf32>
    %cst_25 = arith.constant dense<0xFF800000> : vector<2x128xf32>
    %191 = vector.multi_reduction <maximumf>, %190, %cst_25 [1] : vector<2x62x128xf32> to vector<2x128xf32>
    %192 = vector.broadcast %164 : vector<1x128xf32> to vector<2x128xf32>
    %193 = arith.addf %191, %192 : vector<2x128xf32>
    %cst_26 = arith.constant 0.000000e+00 : f32
    %194 = vector.broadcast %cst_26 : f32 to vector<2x128xf32>
    %195 = arith.maximumf %193, %194 : vector<2x128xf32>
    %c72 = arith.constant 72 : index
    %c0_27 = arith.constant 0 : index
    %196 = vector.load %arg1[%c72, %c0_27] : memref<576x128xf32, #tpu.memory_space<vmem>>, vector<32x128xf32>
    %c104 = arith.constant 104 : index
    %c0_28 = arith.constant 0 : index
    %197 = vector.load %arg1[%c104, %c0_28] : memref<576x128xf32, #tpu.memory_space<vmem>>, vector<1x128xf32>
    %198 = tpu.concatenate %161, %158 in 0 : vector<2x32xf32>, vector<2x32xf32> -> vector<4x32xf32>
    %cst_29 = arith.constant dense<0.000000e+00> : vector<4x128xf32>
    %199 = tpu.matmul %198, %196, %cst_29 {dimension_numbers = #tpu.dot_dimension_numbers<[1], [0], [0], [1], [0, 0, 1, 1], [], []>} : vector<4x32xf32>, vector<32x128xf32>, vector<4x128xf32> -> vector<4x128xf32>
    %200 = vector.extract_strided_slice %199 {offsets = [0, 0], sizes = [2, 128], strides = [1, 1]} : vector<4x128xf32> to vector<2x128xf32>
    %201 = vector.extract_strided_slice %199 {offsets = [2, 0], sizes = [2, 128], strides = [1, 1]} : vector<4x128xf32> to vector<2x128xf32>
    %202 = arith.maximumf %200, %201 : vector<2x128xf32>
    %203 = vector.broadcast %197 : vector<1x128xf32> to vector<2x128xf32>
    %204 = arith.addf %202, %203 : vector<2x128xf32>
    %cst_30 = arith.constant 0.000000e+00 : f32
    %205 = vector.broadcast %cst_30 : f32 to vector<2x128xf32>
    %206 = arith.maximumf %204, %205 : vector<2x128xf32>
    %c112 = arith.constant 112 : index
    %c0_31 = arith.constant 0 : index
    %207 = vector.load %arg1[%c112, %c0_31] : memref<576x128xf32, #tpu.memory_space<vmem>>, vector<64x128xf32>
    %c176 = arith.constant 176 : index
    %c0_32 = arith.constant 0 : index
    %208 = vector.load %arg1[%c176, %c0_32] : memref<576x128xf32, #tpu.memory_space<vmem>>, vector<1x128xf32>
    %cst_33 = arith.constant dense<0.000000e+00> : vector<2x128xf32>
    %209 = tpu.matmul %162, %207, %cst_33 {dimension_numbers = #tpu.dot_dimension_numbers<[1], [0], [0], [1], [0, 0, 1, 1], [], []>} : vector<2x64xf32>, vector<64x128xf32>, vector<2x128xf32> -> vector<2x128xf32>
    %210 = vector.broadcast %208 : vector<1x128xf32> to vector<2x128xf32>
    %211 = arith.addf %209, %210 : vector<2x128xf32>
    %cst_34 = arith.constant 0.000000e+00 : f32
    %212 = vector.broadcast %cst_34 : f32 to vector<2x128xf32>
    %213 = arith.maximumf %211, %212 : vector<2x128xf32>
    %c184 = arith.constant 184 : index
    %c0_35 = arith.constant 0 : index
    %214 = vector.load %arg1[%c184, %c0_35] : memref<576x128xf32, #tpu.memory_space<vmem>>, vector<128x128xf32>
    %c312 = arith.constant 312 : index
    %c0_36 = arith.constant 0 : index
    %215 = vector.load %arg1[%c312, %c0_36] : memref<576x128xf32, #tpu.memory_space<vmem>>, vector<128x128xf32>
    %c440 = arith.constant 440 : index
    %c0_37 = arith.constant 0 : index
    %216 = vector.load %arg1[%c440, %c0_37] : memref<576x128xf32, #tpu.memory_space<vmem>>, vector<128x128xf32>
    %c568 = arith.constant 568 : index
    %c0_38 = arith.constant 0 : index
    %217 = vector.load %arg1[%c568, %c0_38] : memref<576x128xf32, #tpu.memory_space<vmem>>, vector<1x128xf32>
    %cst_39 = arith.constant dense<0.000000e+00> : vector<2x128xf32>
    %218 = tpu.matmul %206, %215, %cst_39 {dimension_numbers = #tpu.dot_dimension_numbers<[1], [0], [0], [1], [0, 0, 1, 1], [], []>} : vector<2x128xf32>, vector<128x128xf32>, vector<2x128xf32> -> vector<2x128xf32>
    %cst_40 = arith.constant dense<0.000000e+00> : vector<2x128xf32>
    %219 = tpu.matmul %213, %216, %cst_40 {dimension_numbers = #tpu.dot_dimension_numbers<[1], [0], [0], [1], [0, 0, 1, 1], [], []>} : vector<2x128xf32>, vector<128x128xf32>, vector<2x128xf32> -> vector<2x128xf32>
    %220 = arith.addf %218, %219 : vector<2x128xf32>
    %cst_41 = arith.constant dense<0.000000e+00> : vector<2x128xf32>
    %221 = tpu.matmul %195, %214, %cst_41 {dimension_numbers = #tpu.dot_dimension_numbers<[1], [0], [0], [1], [0, 0, 1, 1], [], []>} : vector<2x128xf32>, vector<128x128xf32>, vector<2x128xf32> -> vector<2x128xf32>
    %222 = arith.addf %220, %221 : vector<2x128xf32>
    %223 = vector.broadcast %217 : vector<1x128xf32> to vector<2x128xf32>
    %224 = arith.addf %222, %223 : vector<2x128xf32>
    %c0_42 = arith.constant 0 : index
    %c0_43 = arith.constant 0 : index
    %225 = vector.load %arg2[%c0_42, %c0_43] : memref<2x128xf32, #tpu.memory_space<vmem>>, vector<2x128xf32>
    tpu.vector_store %arg2[%c0_42, %c0_43], %224 {strides = array<i32>} : memref<2x128xf32, #tpu.memory_space<vmem>>, vector<2x128xf32>,
    return
  }
}

</mosaic_0001>

<bundles_post_ra>
// kernel: fwd.1
= control target key start
LH: loop header
LB: loop body
LE: loop exit
PB: predicated region body
PF: predicated region fallthrough
CT: control target
= control target key end

     0   :  { %7 = vsyncpa [#allocation3], 0  ;;  %s2886_s0 = inlined_call_operand.hbm [shape: f32[16,16], index: 0, kind: input, shape index: {}]   ;;  %s2887_s1 = inlined_call_operand.hbm [shape: f32[576,128], index: 1, kind: input, shape index: {}]   ;;  %s2888_s2 = inlined_call_operand.hbm [shape: f32[2,128], index: 2, kind: output, shape index: {}]  }
   0x1   :  { %8 = vsyncpa [#allocation6], 0 }
   0x2   :  { %9 = vsyncpa [#allocation4], 0  ;;  %s2500_s9 = smov [#allocation2]   ;;  %s2428_s13 = scalar_lea.hbm %s2886_s0, 256 }
   0x3   :  { %s15_s10 = sshll.u32 %s2500_s9, 4  ;;  %p2429_p0 = scmp.ne.s32.totalorder %s2886_s0, %s2428_s13  ;;  %s16_s10 = int_to_ptr.vmem [resolvable:$true] %s15_s10 }
   0x4   :  { %p2432_p1 = scmp.lt.u32.totalorder %s2428_s13, %s2886_s0 }
   0x6   :  { %p2434_p2 = pnand %p2432_p1, %p2429_p0 }
   0x8   :  { %2437 = shalt.err (!%p2434_p2)
}
   0x9   :  { %s2438_s18 = scalar_lea.vmem %s16_s10, 256  ;;  %p2443_p4 = scmp.lt.s32.totalorder %s16_s10, %s16_s10 }
   0xa   :  { %p2439_p3 = scmp.ne.s32.totalorder %s16_s10, %s2438_s18  ;;  %p2444_p5 = scmp.lt.s32.totalorder %s2438_s18, %s2438_s18 }
   0xc   :  { %p2445_p6 = por %p2444_p5, %p2443_p4 }
   0xe   :  { %p2446_p7 = pnand %p2445_p6, %p2439_p3 }
  0x10   :  { %2449 = shalt.err (!%p2446_p7)
}
  0x11   :  { %s2501_s19 = smov 128   ;;  %s2502_s20 = smov 8  }
  0x12   :  { %21 = dma.hbm_to_vmem [thread:$0]  %s2886_s0, 256, %s16_s10, [#allocation3], %s2501_s19, %s2501_s19, %s2502_s20  }
  0x13   :  { %s2503_s23 = smov [#allocation5]   ;;  %s2450_s27 = scalar_lea.hbm %s2887_s1, 9216 }
  0x14   :  { %s27_s24 = sshll.u32 %s2503_s23, 4  ;;  %p2451_p8 = scmp.ne.s32.totalorder %s2887_s1, %s2450_s27  ;;  %s28_s24 = int_to_ptr.vmem [resolvable:$true] %s27_s24 }
  0x15   :  { %p2454_p9 = scmp.lt.u32.totalorder %s2450_s27, %s2887_s1 }
  0x17   :  { %p2456_p10 = pnand %p2454_p9, %p2451_p8 }
  0x19   :  { %2459 = shalt.err (!%p2456_p10)
}
  0x1a   :  { %s2460_s4 = scalar_lea.vmem %s28_s24, 9216  ;;  %p2465_p12 = scmp.lt.s32.totalorder %s28_s24, %s28_s24 }
  0x1b   :  { %p2461_p11 = scmp.ne.s32.totalorder %s28_s24, %s2460_s4  ;;  %p2466_p13 = scmp.lt.s32.totalorder %s2460_s4, %s2460_s4 }
  0x1d   :  { %p2467_p0 = por %p2466_p13, %p2465_p12 }
  0x1f   :  { %p2468_p1 = pnand %p2467_p0, %p2461_p11 }
  0x21   :  { %2471 = shalt.err (!%p2468_p1)
}
  0x22   :  { %33 = dma.hbm_to_vmem [thread:$0]  %s2887_s1, 9216, %s28_s24, [#allocation6], %s2501_s19, %s2501_s19, %s2502_s20  }
  0x23   :  { %2494 = dma.done.wait [#allocation3], 256  }
  0x24   :  { %2495 = vsyncadd [#allocation3], 4294967040 }
  0x25   :  { %2496 = dma.done.wait [#allocation6], 9216  }
  0x26   :  { %2497 = vsyncadd [#allocation6], 4294958080  ;;  %v2504_v0 = vmov 0.0|0.0   ;;  %vm2505_vm0 = vmmov 0   ;;  %v2506_v1 = vmov 0.0   ;;  %vm53_vm1 = vcmask 130048  }
  0x27   :  { %2227 = vmatprep.subr.bf16.mxu1 %v2504_v0  ;;  %2018 = vmatprep.mubr.msk.f32.mxu1 %vm2505_vm0, %v2506_v1  ;;  %v40_v2 = vld [vmem:[#allocation5] sm:$0xff]  ;;  %v41_v3 = vld [vmem:[#allocation5 + $0x8] sm:$0xff]  ;;  %v47_v4 = vld [vmem:[#allocation2] sm:$0xff]  ;;  %v2507_v13 = vmov 1983009808   ;;  %v141_v15 = vlaneseq  ;;  %s2508_s1 = smov 64  }
  0x28   :  { %v2211_v5 = vpack.c.bf16 %v41_v3, %v40_v2  ;;  %1985 = vmatprep.mubr.msk.f32.mxu0 %vm53_vm1, %v47_v4  ;;  %v42_v6 = vld [vmem:[#allocation5 + $0x10] sm:$0xff]  ;;  %v43_v7 = vld [vmem:[#allocation5 + $0x18] sm:$0xff]  ;;  %v44_v10 = vld [vmem:[#allocation5 + $0x20] sm:$0xff]  ;;  %v139_v14 = vunpack.c.l.s4 %v2507_v13  ;;  %s2509_s6 = smov 32   ;;  %vm179_vm2 = vcmask 261120   ;;  %vm1385_vm3 = vcmask 1041408  }
  0x29   :  { %v2554_v8 = vpack.c.bf16 %v43_v7, %v42_v6  ;;  %v48_v9 = vld [vmem:[#allocation2 + $0x8] sm:$0xff]  ;;  %v45_v11 = vld [vmem:[#allocation5 + $0x28] sm:$0xff]  ;;  %v1848_v16 = vld [vmem:[#allocation5 + $0x30] ss:$0 sm:$0xff]  ;;  %v2577_v18 = vshrl.u32 %v141_v15, 7  ;;  %vm1485_vm4 = vcmask 523264  }
  0x2a   :  { %2212 = vmatprep.subr.bf16.mxu0 %v2211_v5  ;;  %v2560_v12 = vpack.c.bf16 %v45_v11, %v44_v10  ;;  %v140_v17 = vunpack.c.0.s8 %v139_v14  ;;  %vm1336_vm5 = vcmask 1045504   ;;  %vm1752_vm6 = vcmask 1041409   ;;  %s2510_s7 = smov [#allocation7]  }
  0x2b   :  { %2214 = vmatpush3.bf16.msra.mxu0 %v2211_v5  ;;  %2229 = vmatpush3.bf16.msra.mxu1 %v2554_v8  ;;  %s1838_s8 = sshll.u32 %s2510_s7, 4  ;;  %s1839_s8 = int_to_ptr.vmem [resolvable:$true] %s1838_s8 }
  0x2c   :  { %2215 = vmatprep.subr.bf16.mxu0 %v2504_v0  ;;  %2230 = vmatprep.subr.bf16.mxu1 %v2504_v0  ;;  %v2584_v23 = vsub.s32 %v140_v17, %v2577_v18  ;;  %s2472_s9 = scalar_lea.vmem %s1839_s8, 32  ;;  %p2477_p3 = scmp.lt.s32.totalorder %s1839_s8, %s1839_s8 }
  0x2d   :  { %p2473_p2 = scmp.ne.s32.totalorder %s1839_s8, %s2472_s9  ;;  %p2478_p4 = scmp.lt.s32.totalorder %s2472_s9, %s2472_s9 }
  0x2e   :  { %1986 = vmatmul.mubr.msk.f32.vlgmr.msra.gmra.mrb[0].mxu0 %vm53_vm1, %v48_v9 }
  0x2f   :  { %2217 = vmatpush3.bf16.msra.mxu0 %v2554_v8  ;;  %1996 = vmatprep.mubr.msk.f32.mxu0 %vm2505_vm0, %v2506_v1  ;;  %p2479_p5 = por %p2478_p4, %p2477_p3 }
  0x30   :  { %2218 = vmatprep.subr.bf16.mxu0 %v2504_v0  ;;  %2232 = vmatpush3.bf16.msra.mxu1 %v2560_v12 }
  0x31   :  { %2239 = vmatprep.subr.bf16.mxu1 %v2504_v0  ;;  %p2480_p6 = pnand %p2479_p5, %p2473_p2 }
  0x33   :  { %2220 = vmatpush3.bf16.msra.mxu0 %v2560_v12 }
  0x34   :  { %2221 = vmatprep.subr.bf16.mxu0 %v2504_v0 }
  0x36   :  { %1997 = vmatmul.mubr.f32.vlgmr.msra.gmra.mrb[2].mxu0 %v2506_v1 }
  0x37   :  { %2223 = vmatpush3.bf16.msra.mxu0 %v2554_v8  ;;  %2007 = vmatprep.mubr.msk.f32.mxu0 %vm2505_vm0, %v2506_v1 }
  0x38   :  { %2224 = vmatprep.subr.bf16.mxu0 %v2504_v0 }
  0x3b   :  { %2226 = vmatpush3.bf16.msra.mxu0 %v2560_v12 }
  0x3c   :  { %2233 = vmatprep.subr.bf16.mxu0 %v2504_v0 }
 0x101   :  { %v1987_v19 = vpop.f32.mrb[0].mxu0 }
 0x102   :  { %v2579_v20 = vadd.f32 %v1987_v19, %v1848_v16  ;;  %v126_v21 = vpop.f32.mrb[1].mxu0 }
 0x103   :  { %v2581_v22 = vadd.f32 %v1848_v16, %v126_v21 }
 0x105   :  { %v144_v24 = vrot.slane %v2581_v22, %v2584_v23  ;;  %v137_v62 = vcombine.high %v2581_v22, %v2581_v22 }
 0x107   :  { %v152_v43 = vcombine.high %v144_v24, %v144_v24  ;;  %v151_v63 = vrot.slane %v137_v62, %v2584_v23 }
 0x109   :  { %v249_v25 = vpop.f32.mrb[2].mxu0 }
 0x10a   :  { %v253_v26 = vadd.f32 %v249_v25, %v144_v24  ;;  %v1998_v27 = vpop.f32.mrb[3].mxu0  ;;  %v153_v25 = vcombine.high %v151_v63, %v151_v63 }
 0x10c   :  { %2364 = vtanh.f32 %v253_v26  ;;  %v1851_v29 = vmul.f32 -1.442695, %v253_v26 }
 0x10e   :  { %2366 = vpow2.f32 %v1851_v29 }
 0x116   :  { %v2365_v28 = vpop.eup %2364 }
 0x117   :  { %263 = vrot.lane.b32.xlu0 %v2365_v28, %s2508_s1 }
 0x118   :  { %v2367_v30 = vpop.eup %2366 }
 0x119   :  { %v257_v31 = vadd.f32 1.0, %v2367_v30 }
 0x11b   :  { %2368 = vrcp.f32 %v257_v31 }
 0x125   :  { %v2369_v32 = vpop.eup %2368 }
 0x126   :  { %v261_v35 = vmul.f32 0.0, %v2369_v32 }
 0x189   :  { %v264_v33 = vpop.permute.xlu0 %263 }
 0x18a   :  { %v266_v34 = vmul.f32 %v2369_v32, %v264_v33 }
 0x18c   :  { %268 = vrot.lane.b32.xlu0 %v266_v34, %s2509_s6 }
 0x1fe   :  { %v269_v36 = vpop.permute.xlu0 %268 }
 0x1ff   :  { %v271_v37 = vadd.f32 %v269_v36, %v261_v35 }
 0x201   :  { %2370 = vtanh.f32 %v271_v37 }
 0x20b   :  { %v2371_v38 = vpop.eup %2370 }
 0x20c   :  { %274 = vrot.lane.b32.xlu1 %v2371_v38, %s2508_s1 }
 0x27e   :  { %v275_v39 = vpop.permute.xlu1 %274 }
 0x27f   :  { %v277_v40 = vmul.f32 %v2369_v32, %v275_v39 }
 0x281   :  { %v285_v41 = vrot.slane %v277_v40, %v2584_v23 }
 0x283   :  { %286 = vrot.lane.b32.xlu1 %v285_v41, %s2509_s6 }
 0x2f5   :  { %v287_v42 = vpop.permute.xlu1 %286 }
 0x2f6   :  { %2008 = vmatmul.mubr.msk.f32.vlgmr.msra.gmra.mrb[4].mxu0 %vm179_vm2, %v287_v42 }
 0x2f7   :  { %2235 = vmatpush3.bf16.msra.mxu0 %v2554_v8  ;;  %2029 = vmatprep.mubr.msk.f32.mxu0 %vm2505_vm0, %v2506_v1 }
 0x2f8   :  { %2236 = vmatprep.subr.bf16.mxu0 %v2504_v0 }
 0x2fb   :  { %2238 = vmatpush3.bf16.msra.mxu0 %v2560_v12 }
 0x2fc   :  { %2245 = vmatprep.subr.bf16.mxu0 %v2504_v0 }
 0x3c9   :  { %v356_v44 = vpop.f32.mrb[4].mxu0 }
 0x3ca   :  { %v360_v45 = vadd.f32 %v356_v44, %v152_v43  ;;  %v2009_v46 = vpop.f32.mrb[5].mxu0  ;;  %v161_v44 = vrot.slane %v2579_v20, %v2584_v23 }
 0x3cc   :  { %2372 = vtanh.f32 %v360_v45  ;;  %v1853_v48 = vmul.f32 -1.442695, %v360_v45 }
 0x3ce   :  { %2374 = vpow2.f32 %v1853_v48 }
 0x3d6   :  { %v2373_v47 = vpop.eup %2372 }
 0x3d7   :  { %370 = vrot.lane.b32.xlu0 %v2373_v47, %s2508_s1 }
 0x3d8   :  { %v2375_v49 = vpop.eup %2374 }
 0x3d9   :  { %v364_v50 = vadd.f32 1.0, %v2375_v49 }
 0x3db   :  { %2376 = vrcp.f32 %v364_v50 }
 0x3e5   :  { %v2377_v51 = vpop.eup %2376 }
 0x3e6   :  { %v368_v54 = vmul.f32 %v2377_v51, %v271_v37 }
 0x449   :  { %v371_v52 = vpop.permute.xlu0 %370 }
 0x44a   :  { %v373_v53 = vmul.f32 %v2377_v51, %v371_v52 }
 0x44c   :  { %375 = vrot.lane.b32.xlu1 %v373_v53, %s2509_s6 }
 0x4be   :  { %v376_v55 = vpop.permute.xlu1 %375 }
 0x4bf   :  { %v378_v56 = vadd.f32 %v376_v55, %v368_v54 }
 0x4c1   :  { %2378 = vtanh.f32 %v378_v56 }
 0x4cb   :  { %v2379_v57 = vpop.eup %2378 }
 0x4cc   :  { %381 = vrot.lane.b32.xlu0 %v2379_v57, %s2508_s1 }
 0x53e   :  { %v382_v58 = vpop.permute.xlu0 %381 }
 0x53f   :  { %v384_v59 = vmul.f32 %v2377_v51, %v382_v58 }
 0x541   :  { %v392_v60 = vrot.slane %v384_v59, %v2584_v23 }
 0x543   :  { %393 = vrot.lane.b32.xlu1 %v392_v60, %s2509_s6 }
 0x5b5   :  { %v394_v61 = vpop.permute.xlu1 %393 }
 0x5b6   :  { %2019 = vmatmul.mubr.msk.f32.vlgmr.msra.gmra.mrb[0].mxu1 %vm179_vm2, %v394_v61 }
 0x5b7   :  { %2241 = vmatpush3.bf16.msra.mxu1 %v2554_v8  ;;  %2040 = vmatprep.mubr.msk.f32.mxu1 %vm2505_vm0, %v2506_v1 }
 0x5b8   :  { %2242 = vmatprep.subr.bf16.mxu1 %v2504_v0 }
 0x5bb   :  { %2244 = vmatpush3.bf16.msra.mxu1 %v2560_v12 }
 0x5bc   :  { %2251 = vmatprep.subr.bf16.mxu1 %v2504_v0 }
 0x689   :  { %v463_v2 = vpop.f32.mrb[0].mxu1 }
 0x68a   :  { %v467_v3 = vadd.f32 %v463_v2, %v151_v63  ;;  %v2020_v4 = vpop.f32.mrb[1].mxu1  ;;  %v169_v63 = vcombine.high %v161_v44, %v161_v44 }
 0x68c   :  { %2380 = vtanh.f32 %v467_v3  ;;  %v1855_v6 = vmul.f32 -1.442695, %v467_v3 }
 0x68e   :  { %2382 = vpow2.f32 %v1855_v6 }
 0x696   :  { %v2381_v5 = vpop.eup %2380 }
 0x697   :  { %477 = vrot.lane.b32.xlu0 %v2381_v5, %s2508_s1 }
 0x698   :  { %v2383_v7 = vpop.eup %2382 }
 0x699   :  { %v471_v9 = vadd.f32 1.0, %v2383_v7 }
 0x69b   :  { %2384 = vrcp.f32 %v471_v9 }
 0x6a5   :  { %v2385_v10 = vpop.eup %2384 }
 0x6a6   :  { %v475_v14 = vmul.f32 %v2385_v10, %v378_v56 }
 0x709   :  { %v478_v11 = vpop.permute.xlu0 %477 }
 0x70a   :  { %v480_v13 = vmul.f32 %v2385_v10, %v478_v11 }
 0x70c   :  { %482 = vrot.lane.b32.xlu1 %v480_v13, %s2509_s6 }
 0x77e   :  { %v483_v15 = vpop.permute.xlu1 %482 }
 0x77f   :  { %v485_v16 = vadd.f32 %v483_v15, %v475_v14 }
 0x781   :  { %2386 = vtanh.f32 %v485_v16 }
 0x78b   :  { %v2387_v17 = vpop.eup %2386 }
 0x78c   :  { %488 = vrot.lane.b32.xlu0 %v2387_v17, %s2508_s1 }
 0x7fe   :  { %v489_v19 = vpop.permute.xlu0 %488 }
 0x7ff   :  { %v491_v21 = vmul.f32 %v2385_v10, %v489_v19 }
 0x801   :  { %v499_v22 = vrot.slane %v491_v21, %v2584_v23 }
 0x803   :  { %500 = vrot.lane.b32.xlu1 %v499_v22, %s2509_s6  ;;  %v154_v22 = vcombine.high %v2579_v20, %v2579_v20 }
 0x875   :  { %v501_v24 = vpop.permute.xlu1 %500 }
 0x876   :  { %2030 = vmatmul.mubr.msk.f32.vlgmr.msra.gmra.mrb[6].mxu0 %vm179_vm2, %v501_v24  ;;  %v168_v24 = vrot.slane %v154_v22, %v2584_v23  ;;  %v1078_v22 = vsub.s32 1, %v2577_v18 }
 0x877   :  { %2247 = vmatpush3.bf16.msra.mxu0 %v2554_v8  ;;  %2051 = vmatprep.mubr.msk.f32.mxu0 %vm2505_vm0, %v2506_v1 }
 0x878   :  { %2248 = vmatprep.subr.bf16.mxu0 %v2504_v0 }
 0x87b   :  { %2250 = vmatpush3.bf16.msra.mxu0 %v2560_v12 }
 0x87c   :  { %2257 = vmatprep.subr.bf16.mxu0 %v2504_v0 }
 0x949   :  { %v570_v26 = vpop.f32.mrb[6].mxu0 }
 0x94a   :  { %v574_v27 = vadd.f32 %v570_v26, %v153_v25  ;;  %v2031_v28 = vpop.f32.mrb[7].mxu0 }
 0x94c   :  { %2388 = vtanh.f32 %v574_v27  ;;  %v1857_v30 = vmul.f32 -1.442695, %v574_v27 }
 0x94e   :  { %2390 = vpow2.f32 %v1857_v30 }
 0x956   :  { %v2389_v29 = vpop.eup %2388 }
 0x957   :  { %584 = vrot.lane.b32.xlu0 %v2389_v29, %s2508_s1 }
 0x958   :  { %v2391_v31 = vpop.eup %2390 }
 0x959   :  { %v578_v32 = vadd.f32 1.0, %v2391_v31 }
 0x95b   :  { %2392 = vrcp.f32 %v578_v32 }
 0x965   :  { %v2393_v33 = vpop.eup %2392 }
 0x966   :  { %v582_v36 = vmul.f32 %v2393_v33, %v485_v16 }
 0x9c9   :  { %v585_v34 = vpop.permute.xlu0 %584 }
 0x9ca   :  { %v587_v35 = vmul.f32 %v2393_v33, %v585_v34 }
 0x9cc   :  { %589 = vrot.lane.b32.xlu1 %v587_v35, %s2509_s6 }
 0xa3e   :  { %v590_v37 = vpop.permute.xlu1 %589 }
 0xa3f   :  { %v592_v38 = vadd.f32 %v590_v37, %v582_v36 }
 0xa41   :  { %2394 = vtanh.f32 %v592_v38 }
 0xa4b   :  { %v2395_v39 = vpop.eup %2394 }
 0xa4c   :  { %595 = vrot.lane.b32.xlu0 %v2395_v39, %s2508_s1 }
 0xabe   :  { %v596_v40 = vpop.permute.xlu0 %595 }
 0xabf   :  { %v598_v41 = vmul.f32 %v2393_v33, %v596_v40 }
 0xac1   :  { %v606_v42 = vrot.slane %v598_v41, %v2584_v23 }
 0xac3   :  { %607 = vrot.lane.b32.xlu1 %v606_v42, %s2509_s6  ;;  %v170_v42 = vcombine.high %v168_v24, %v168_v24 }
 0xb35   :  { %v608_v43 = vpop.permute.xlu1 %607 }
 0xb36   :  { %2041 = vmatmul.mubr.msk.f32.vlgmr.msra.gmra.mrb[2].mxu1 %vm179_vm2, %v608_v43 }
 0xb37   :  { %2253 = vmatpush3.bf16.msra.mxu1 %v2554_v8  ;;  %2062 = vmatprep.mubr.msk.f32.mxu1 %vm2505_vm0, %v2506_v1 }
 0xb38   :  { %2254 = vmatprep.subr.bf16.mxu1 %v2504_v0 }
 0xb3b   :  { %2256 = vmatpush3.bf16.msra.mxu1 %v2560_v12 }
 0xb3c   :  { %2263 = vmatprep.subr.bf16.mxu1 %v2504_v0 }
 0xc09   :  { %v677_v45 = vpop.f32.mrb[2].mxu1 }
 0xc0a   :  { %v681_v46 = vadd.f32 %v677_v45, %v161_v44  ;;  %v2042_v47 = vpop.f32.mrb[3].mxu1 }
 0xc0c   :  { %2396 = vtanh.f32 %v681_v46  ;;  %v1859_v49 = vmul.f32 -1.442695, %v681_v46 }
 0xc0e   :  { %2398 = vpow2.f32 %v1859_v49 }
 0xc16   :  { %v2397_v48 = vpop.eup %2396 }
 0xc17   :  { %691 = vrot.lane.b32.xlu0 %v2397_v48, %s2508_s1 }
 0xc18   :  { %v2399_v50 = vpop.eup %2398 }
 0xc19   :  { %v685_v51 = vadd.f32 1.0, %v2399_v50 }
 0xc1b   :  { %2400 = vrcp.f32 %v685_v51 }
 0xc25   :  { %v2401_v52 = vpop.eup %2400 }
 0xc26   :  { %v689_v55 = vmul.f32 %v2401_v52, %v592_v38 }
 0xc89   :  { %v692_v53 = vpop.permute.xlu0 %691 }
 0xc8a   :  { %v694_v54 = vmul.f32 %v2401_v52, %v692_v53 }
 0xc8c   :  { %696 = vrot.lane.b32.xlu1 %v694_v54, %s2509_s6 }
 0xcfe   :  { %v697_v56 = vpop.permute.xlu1 %696 }
 0xcff   :  { %v699_v57 = vadd.f32 %v697_v56, %v689_v55 }
 0xd01   :  { %2402 = vtanh.f32 %v699_v57 }
 0xd0b   :  { %v2403_v58 = vpop.eup %2402 }
 0xd0c   :  { %702 = vrot.lane.b32.xlu0 %v2403_v58, %s2508_s1  ;;  %v1472_v58 = vld [vmem:[#allocation5 + $0x70] sm:$0xff] }
 0xd7e   :  { %v703_v59 = vpop.permute.xlu0 %702 }
 0xd7f   :  { %v705_v60 = vmul.f32 %v2401_v52, %v703_v59  ;;  %v1473_v59 = vld [vmem:[#allocation5 + $0x78] sm:$0xff] }
 0xd81   :  { %v713_v61 = vrot.slane %v705_v60, %v2584_v23  ;;  %v1474_v60 = vld [vmem:[#allocation5 + $0x80] sm:$0xff] }
 0xd83   :  { %714 = vrot.lane.b32.xlu1 %v713_v61, %s2509_s6  ;;  %v2270_v61 = vpack.c.bf16 %v1473_v59, %v1472_v58  ;;  %v1602_v58 = vld [vmem:[#allocation5 + $0x208] sm:$0xff]  ;;  %v1603_v59 = vld [vmem:[#allocation5 + $0x210] sm:$0xff] }
 0xdf5   :  { %v715_v62 = vpop.permute.xlu1 %714 }
 0xdf6   :  { %2052 = vmatmul.mubr.msk.f32.vlgmr.msra.gmra.mrb[8].mxu0 %vm179_vm2, %v715_v62  ;;  %v1475_v62 = vld [vmem:[#allocation5 + $0x88] sm:$0xff] }
 0xdf7   :  { %2259 = vmatpush3.bf16.msra.mxu0 %v2554_v8  ;;  %2073 = vmatprep.mubr.msk.f32.mxu0 %vm2505_vm0, %v2506_v1 }
 0xdf8   :  { %2260 = vmatprep.subr.bf16.mxu0 %v2504_v0 }
 0xdfb   :  { %2262 = vmatpush3.bf16.msra.mxu0 %v2560_v12 }
 0xdfc   :  { %2269 = vmatprep.subr.bf16.mxu0 %v2504_v0 }
 0xec9   :  { %v784_v2 = vpop.f32.mrb[8].mxu0 }
 0xeca   :  { %v788_v3 = vadd.f32 %v784_v2, %v169_v63  ;;  %v2053_v4 = vpop.f32.mrb[9].mxu0  ;;  %v1368_v63 = vld [vmem:[#allocation5 + $0x48] sm:$0xff]  ;;  %v1369_v2 = vld [vmem:[#allocation5 + $0x50] sm:$0xff] }
 0xecb   :  { %v1370_v4 = vld [vmem:[#allocation5 + $0x58] sm:$0xff] }
 0xecc   :  { %2404 = vtanh.f32 %v788_v3  ;;  %v1861_v6 = vmul.f32 -1.442695, %v788_v3  ;;  %v2264_v3 = vpack.c.bf16 %v1369_v2, %v1368_v63  ;;  %v1604_v2 = vld [vmem:[#allocation5 + $0x218] sm:$0xff] }
 0xece   :  { %2406 = vpow2.f32 %v1861_v6  ;;  %v1371_v6 = vld [vmem:[#allocation5 + $0x60] sm:$0xff] }
 0xed6   :  { %v2405_v5 = vpop.eup %2404 }
 0xed7   :  { %798 = vrot.lane.b32.xlu0 %v2405_v5, %s2508_s1  ;;  %v2273_v5 = vpack.c.bf16 %v1475_v62, %v1474_v60  ;;  %v2297_v60 = vpack.c.bf16 %v1603_v59, %v1602_v58  ;;  %v1587_v62 = vld [vmem:[#allocation5 + $0x190] sm:$0xff] }
 0xed8   :  { %v2407_v8 = vpop.eup %2406 }
 0xed9   :  { %v792_v7 = vadd.f32 1.0, %v2407_v8  ;;  %v1476_v8 = vld [vmem:[#allocation5 + $0x90] sm:$0xff] }
 0xedb   :  { %2408 = vrcp.f32 %v792_v7  ;;  %v1477_v7 = vld [vmem:[#allocation5 + $0x98] sm:$0xff] }
 0xee5   :  { %v2409_v9 = vpop.eup %2408 }
 0xee6   :  { %v796_v12 = vmul.f32 %v2409_v9, %v699_v57 }
 0xf49   :  { %v799_v10 = vpop.permute.xlu0 %798 }
 0xf4a   :  { %v801_v11 = vmul.f32 %v2409_v9, %v799_v10  ;;  %v2276_v10 = vpack.c.bf16 %v1477_v7, %v1476_v8  ;;  %v1606_v7 = vld [vmem:[#allocation5 + $0x228] sm:$0xff] }
 0xf4c   :  { %803 = vrot.lane.b32.xlu1 %v801_v11, %s2509_s6 }
 0xfbe   :  { %v804_v13 = vpop.permute.xlu1 %803 }
 0xfbf   :  { %v806_v14 = vadd.f32 %v804_v13, %v796_v12  ;;  %v1478_v12 = vld [vmem:[#allocation5 + $0xa0] sm:$0xff]  ;;  %v1479_v13 = vld [vmem:[#allocation5 + $0xa8] sm:$0xff] }
 0xfc1   :  { %2410 = vtanh.f32 %v806_v14 }
 0xfcb   :  { %v2411_v15 = vpop.eup %2410 }
 0xfcc   :  { %809 = vrot.lane.b32.xlu0 %v2411_v15, %s2508_s1 }
0x103e   :  { %v810_v16 = vpop.permute.xlu0 %809 }
0x103f   :  { %v812_v17 = vmul.f32 %v2409_v9, %v810_v16  ;;  %v2267_v9 = vpack.c.bf16 %v1371_v6, %v1370_v4  ;;  %v1589_v6 = vld [vmem:[#allocation5 + $0x1a0] sm:$0xff] }
0x1041   :  { %v820_v19 = vrot.slane %v812_v17, %v2584_v23 }
0x1043   :  { %821 = vrot.lane.b32.xlu1 %v820_v19, %s2509_s6 }
0x10b5   :  { %v822_v21 = vpop.permute.xlu1 %821 }
0x10b6   :  { %2063 = vmatmul.mubr.msk.f32.vlgmr.msra.gmra.mrb[4].mxu1 %vm179_vm2, %v822_v21 }
0x10b7   :  { %2084 = vmatprep.mubr.msk.f32.mxu1 %vm2505_vm0, %v2506_v1  ;;  %2265 = vmatpush3.bf16.msra.mxu1 %v2264_v3  ;;  %v1605_v3 = vld [vmem:[#allocation5 + $0x220] sm:$0xff] }
0x10b8   :  { %2266 = vmatprep.subr.bf16.mxu1 %v2504_v0  ;;  %v2300_v4 = vpack.c.bf16 %v1605_v3, %v1604_v2 }
0x10bb   :  { %2268 = vmatpush3.bf16.msra.mxu1 %v2267_v9  ;;  %v1607_v9 = vld [vmem:[#allocation5 + $0x230] sm:$0xff] }
0x10bc   :  { %2281 = vmatprep.subr.bf16.mxu1 %v2504_v0 }
0x1189   :  { %v891_v25 = vpop.f32.mrb[4].mxu1 }
0x118a   :  { %v895_v26 = vadd.f32 %v891_v25, %v168_v24  ;;  %v2064_v27 = vpop.f32.mrb[5].mxu1 }
0x118b   :  { %v1043_v27 = vsub.s32 0, %v2577_v18 }
0x118c   :  { %2412 = vtanh.f32 %v895_v26  ;;  %v1863_v29 = vmul.f32 -1.442695, %v895_v26 }
0x118e   :  { %2414 = vpow2.f32 %v1863_v29  ;;  %v1592_v29 = vld [vmem:[#allocation5 + $0x1b8] sm:$0xff] }
0x1196   :  { %v2413_v28 = vpop.eup %2412 }
0x1197   :  { %905 = vrot.lane.b32.xlu0 %v2413_v28, %s2508_s1 }
0x1198   :  { %v2415_v30 = vpop.eup %2414 }
0x1199   :  { %v899_v31 = vadd.f32 1.0, %v2415_v30  ;;  %v1593_v30 = vld [vmem:[#allocation5 + $0x1c0] sm:$0xff] }
0x119b   :  { %2416 = vrcp.f32 %v899_v31  ;;  %v2282_v31 = vpack.c.bf16 %v1593_v30, %v1592_v29 }
0x11a5   :  { %v2417_v32 = vpop.eup %2416 }
0x11a6   :  { %v903_v20 = vmul.f32 %v2417_v32, %v806_v14  ;;  %v2279_v14 = vpack.c.bf16 %v1479_v13, %v1478_v12  ;;  %v1591_v12 = vld [vmem:[#allocation5 + $0x1b0] sm:$0xff] }
0x1209   :  { %v906_v33 = vpop.permute.xlu0 %905 }
0x120a   :  { %v908_v34 = vmul.f32 %v2417_v32, %v906_v33  ;;  %v1577_v33 = vld [vmem:[#allocation5 + $0x140] sm:$0xff] }
0x120c   :  { %910 = vrot.lane.b32.xlu1 %v908_v34, %s2509_s6 }
0x127e   :  { %v911_v35 = vpop.permute.xlu1 %910 }
0x127f   :  { %v913_v36 = vadd.f32 %v911_v35, %v903_v20  ;;  %v1594_v20 = vld [vmem:[#allocation5 + $0x1c8] sm:$0xff]  ;;  %v1595_v35 = vld [vmem:[#allocation5 + $0x1d0] sm:$0xff] }
0x1281   :  { %2418 = vtanh.f32 %v913_v36 }
0x128b   :  { %v2419_v37 = vpop.eup %2418 }
0x128c   :  { %916 = vrot.lane.b32.xlu0 %v2419_v37, %s2508_s1  ;;  %v1578_v37 = vld [vmem:[#allocation5 + $0x148] sm:$0xff] }
0x12fe   :  { %v917_v38 = vpop.permute.xlu0 %916 }
0x12ff   :  { %v919_v39 = vmul.f32 %v2417_v32, %v917_v38  ;;  %v1576_v32 = vld [vmem:[#allocation5 + $0x138] sm:$0xff]  ;;  %v1579_v38 = vld [vmem:[#allocation5 + $0x150] sm:$0xff] }
0x1300   :  { %v2306_v34 = vpack.c.bf16 %v1577_v33, %v1576_v32 }
0x1301   :  { %v927_v40 = vrot.slane %v919_v39, %v2584_v23  ;;  %v2309_v39 = vpack.c.bf16 %v1579_v38, %v1578_v37 }
0x1303   :  { %928 = vrot.lane.b32.xlu1 %v927_v40, %s2509_s6  ;;  %v1596_v40 = vld [vmem:[#allocation5 + $0x1d8] sm:$0xff] }
0x1375   :  { %v929_v41 = vpop.permute.xlu1 %928 }
0x1376   :  { %2074 = vmatmul.mubr.msk.f32.vlgmr.msra.gmra.mrb[10].mxu0 %vm179_vm2, %v929_v41  ;;  %v1597_v41 = vld [vmem:[#allocation5 + $0x1e0] sm:$0xff] }
0x1377   :  { %2103 = vmatprep.mubr.msk.f32.mxu0 %vm2505_vm0, %v2506_v1  ;;  %2271 = vmatpush3.bf16.msra.mxu0 %v2270_v61  ;;  %v1586_v61 = vld [vmem:[#allocation5 + $0x188] sm:$0xff] }
0x1378   :  { %2272 = vmatprep.subr.bf16.mxu0 %v2504_v0  ;;  %v2321_v63 = vpack.c.bf16 %v1587_v62, %v1586_v61 }
0x137b   :  { %2274 = vmatpush3.bf16.msra.mxu0 %v2273_v5  ;;  %v1588_v5 = vld [vmem:[#allocation5 + $0x198] sm:$0xff] }
0x137c   :  { %2275 = vmatprep.subr.bf16.mxu0 %v2504_v0  ;;  %v2324_v8 = vpack.c.bf16 %v1589_v6, %v1588_v5 }
0x137f   :  { %2277 = vmatpush3.bf16.msra.mxu0 %v2276_v10  ;;  %v2303_v10 = vpack.c.bf16 %v1607_v9, %v1606_v7 }
0x1380   :  { %2278 = vmatprep.subr.bf16.mxu0 %v2504_v0 }
0x1383   :  { %2280 = vmatpush3.bf16.msra.mxu0 %v2279_v14 }
0x1384   :  { %2305 = vmatprep.subr.bf16.mxu0 %v2504_v0 }
0x1449   :  { %v998_v43 = vpop.f32.mrb[10].mxu0 }
0x144a   :  { %v1002_v44 = vadd.f32 %v998_v43, %v170_v42  ;;  %v2075_v45 = vpop.f32.mrb[11].mxu0  ;;  %v2288_v42 = vpack.c.bf16 %v1597_v41, %v1596_v40  ;;  %v1580_v43 = vld [vmem:[#allocation5 + $0x158] sm:$0xff] }
0x144c   :  { %2420 = vtanh.f32 %v1002_v44  ;;  %v1865_v47 = vmul.f32 -1.442695, %v1002_v44  ;;  %v1581_v44 = vld [vmem:[#allocation5 + $0x160] sm:$0xff] }
0x144d   :  { %v2312_v45 = vpack.c.bf16 %v1581_v44, %v1580_v43 }
0x144e   :  { %2422 = vpow2.f32 %v1865_v47  ;;  %v1599_v47 = vld [vmem:[#allocation5 + $0x1f0] sm:$0xff] }
0x1456   :  { %v2421_v46 = vpop.eup %2420 }
0x1457   :  { %1012 = vrot.lane.b32.xlu0 %v2421_v46, %s2508_s1  ;;  %v1598_v46 = vld [vmem:[#allocation5 + $0x1e8] sm:$0xff] }
0x1458   :  { %v2423_v48 = vpop.eup %2422 }
0x1459   :  { %v1006_v49 = vadd.f32 1.0, %v2423_v48  ;;  %v2291_v48 = vpack.c.bf16 %v1599_v47, %v1598_v46 }
0x145b   :  { %2424 = vrcp.f32 %v1006_v49  ;;  %v1582_v49 = vld [vmem:[#allocation5 + $0x168] sm:$0xff] }
0x1465   :  { %v2425_v50 = vpop.eup %2424 }
0x1466   :  { %v1010_v53 = vmul.f32 %v2425_v50, %v913_v36  ;;  %v2285_v36 = vpack.c.bf16 %v1595_v35, %v1594_v20 }
0x14c9   :  { %v1013_v51 = vpop.permute.xlu0 %1012 }
0x14ca   :  { %v1015_v52 = vmul.f32 %v2425_v50, %v1013_v51 }
0x14cc   :  { %1017 = vrot.lane.b32.xlu1 %v1015_v52, %s2509_s6  ;;  %v1600_v52 = vld [vmem:[#allocation5 + $0x1f8] sm:$0xff] }
0x153e   :  { %v1018_v54 = vpop.permute.xlu1 %1017 }
0x153f   :  { %v1020_v55 = vadd.f32 %v1018_v54, %v1010_v53  ;;  %v1601_v53 = vld [vmem:[#allocation5 + $0x200] sm:$0xff] }
0x1540   :  { %v2294_v54 = vpack.c.bf16 %v1601_v53, %v1600_v52 }
0x1541   :  { %2426 = vtanh.f32 %v1020_v55  ;;  %v1374_v56 = vcombine.low %v1020_v55, %v1020_v55 }
0x1543   :  { %v1381_v57 = vrot.slane %v1374_v56, %v2584_v23  ;;  %v1585_v56 = vld [vmem:[#allocation5 + $0x180] sm:$0xff] }
0x1545   :  { %1382 = vrot.lane.b32.xlu1 %v1381_v57, %s2508_s1 }
0x154b   :  { %v2427_v11 = vpop.eup %2426 }
0x154c   :  { %1023 = vrot.lane.b32.xlu0 %v2427_v11, %s2508_s1  ;;  %v1590_v11 = vld [vmem:[#allocation5 + $0x1a8] sm:$0xff] }
0x154d   :  { %v2327_v13 = vpack.c.bf16 %v1591_v12, %v1590_v11 }
0x15b7   :  { %v1383_v17 = vpop.permute.xlu1 %1382 }
0x15be   :  { %v1024_v15 = vpop.permute.xlu0 %1023 }
0x15bf   :  { %v1026_v16 = vmul.f32 %v2425_v50, %v1024_v15  ;;  %v1583_v50 = vld [vmem:[#allocation5 + $0x170] sm:$0xff] }
0x15c0   :  { %v2315_v51 = vpack.c.bf16 %v1583_v50, %v1582_v49 }
0x15c1   :  { %v1034_v19 = vrot.slane %v1026_v16, %v2584_v23  ;;  %v1386_v21 = vsel %vm1385_vm3, %v1026_v16, %v1383_v17  ;;  %v1039_v16 = vld [vmem:[#allocation5 + $0x38] sm:$0x7] }
0x15c2   :  { %1388 = vrot.lane.b32.xlu1 %v1386_v21, %s2509_s6  ;;  %v2767_v21 = vrot.slane %v1039_v16, %v1043_v27 }
0x15c3   :  { %1035 = vrot.lane.b32.xlu0 %v1034_v19, %s2509_s6 }
0x1634   :  { %v1389_v24 = vpop.permute.xlu1 %1388 }
0x1635   :  { %2085 = vmatmul.mubr.msk.f32.vlgmr.msra.gmra.mrb[6].mxu1 %vm179_vm2, %v1389_v24  ;;  %v1036_v25 = vpop.permute.xlu0 %1035  ;;  %v2771_v24 = vrot.slane %v1039_v16, %v1078_v22 }
0x1636   :  { %v1038_v26 = vsel %vm179_vm2, %v1036_v25, %v1020_v55  ;;  %2138 = vmatprep.mubr.msk.f32.mxu1 %vm2505_vm0, %v2506_v1  ;;  %2283 = vmatpush3.bf16.msra.mxu1 %v2282_v31  ;;  %v1584_v55 = vld [vmem:[#allocation5 + $0x178] sm:$0xff] }
0x1637   :  { %v2693_v23 = vrot.slane %v1038_v26, %v1078_v22  ;;  %2104 = vmatmul.mubr.msk.f32.vlgmr.msra.gmra.mrb[12].mxu0 %vm1485_vm4, %v1038_v26  ;;  %v2708_v28 = vrot.slane %v1038_v26, %v1043_v27  ;;  %2284 = vmatprep.subr.bf16.mxu1 %v2504_v0  ;;  %v2318_v57 = vpack.c.bf16 %v1585_v56, %v1584_v55 }
0x1638   :  { %2173 = vmatprep.mubr.msk.f32.mxu0 %vm2505_vm0, %v2506_v1  ;;  %2307 = vmatpush3.bf16.msra.mxu0 %v2306_v34 }
0x1639   :  { %1085 = vbcast.lane.b32.xlu1 %v2693_v23, 264  ;;  %1081 = vbcast.lane.b32.xlu0 %v2693_v23, 256 }
0x163a   :  { %2286 = vmatpush3.bf16.msra.mxu1 %v2285_v36  ;;  %2308 = vmatprep.subr.bf16.mxu0 %v2504_v0 }
0x163b   :  { %2287 = vmatprep.subr.bf16.mxu1 %v2504_v0 }
0x163c   :  { %2310 = vmatpush3.bf16.msra.mxu0 %v2309_v39 }
0x163d   :  { %1093 = vbcast.lane.b32.xlu1 %v2693_v23, 280  ;;  %1089 = vbcast.lane.b32.xlu0 %v2693_v23, 272 }
0x163e   :  { %2289 = vmatpush3.bf16.msra.mxu1 %v2288_v42  ;;  %2311 = vmatprep.subr.bf16.mxu0 %v2504_v0 }
0x163f   :  { %2290 = vmatprep.subr.bf16.mxu1 %v2504_v0 }
0x1640   :  { %2313 = vmatpush3.bf16.msra.mxu0 %v2312_v45 }
0x1641   :  { %1169 = vbcast.lane.b32.xlu1 %v2693_v23, 265  ;;  %1165 = vbcast.lane.b32.xlu0 %v2693_v23, 257 }
0x1642   :  { %2292 = vmatpush3.bf16.msra.mxu1 %v2291_v48  ;;  %2314 = vmatprep.subr.bf16.mxu0 %v2504_v0  ;;  %v1297_v48 = vsub.s32 2, %v2577_v18 }
0x1643   :  { %2293 = vmatprep.subr.bf16.mxu1 %v2504_v0 }
0x1644   :  { %2316 = vmatpush3.bf16.msra.mxu0 %v2315_v51  ;;  %v2786_v51 = vrot.slane %v1039_v16, %v1297_v48 }
0x1645   :  { %1177 = vbcast.lane.b32.xlu1 %v2693_v23, 281  ;;  %1173 = vbcast.lane.b32.xlu0 %v2693_v23, 273 }
0x1646   :  { %2295 = vmatpush3.bf16.msra.mxu1 %v2294_v54  ;;  %2317 = vmatprep.subr.bf16.mxu0 %v2504_v0 }
0x1647   :  { %2296 = vmatprep.subr.bf16.mxu1 %v2504_v0 }
0x1648   :  { %2319 = vmatpush3.bf16.msra.mxu0 %v2318_v57 }
0x1649   :  { %1050 = vbcast.lane.b32.xlu1 %v2708_v28, 264  ;;  %1046 = vbcast.lane.b32.xlu0 %v2708_v28, 256 }
0x164a   :  { %2298 = vmatpush3.bf16.msra.mxu1 %v2297_v60  ;;  %2320 = vmatprep.subr.bf16.mxu0 %v2504_v0 }
0x164b   :  { %2299 = vmatprep.subr.bf16.mxu1 %v2504_v0 }
0x164c   :  { %2322 = vmatpush3.bf16.msra.mxu0 %v2321_v63 }
0x164d   :  { %1058 = vbcast.lane.b32.xlu1 %v2708_v28, 280  ;;  %1054 = vbcast.lane.b32.xlu0 %v2708_v28, 272 }
0x164e   :  { %2301 = vmatpush3.bf16.msra.mxu1 %v2300_v4  ;;  %2323 = vmatprep.subr.bf16.mxu0 %v2504_v0 }
0x164f   :  { %2302 = vmatprep.subr.bf16.mxu1 %v2504_v0 }
0x1650   :  { %2325 = vmatpush3.bf16.msra.mxu0 %v2324_v8 }
0x1651   :  { %1101 = vbcast.lane.b32.xlu1 %v2693_v23, 296  ;;  %1097 = vbcast.lane.b32.xlu0 %v2693_v23, 288 }
0x1652   :  { %2304 = vmatpush3.bf16.msra.mxu1 %v2303_v10  ;;  %2326 = vmatprep.subr.bf16.mxu0 %v2504_v0 }
0x1653   :  { %2329 = vmatprep.subr.bf16.mxu1 %v2504_v0 }
0x1654   :  { %2328 = vmatpush3.bf16.msra.mxu0 %v2327_v13 }
0x1655   :  { %1137 = vbcast.lane.b32.xlu1 %v2708_v28, 265  ;;  %1133 = vbcast.lane.b32.xlu0 %v2708_v28, 257 }
0x1659   :  { %1145 = vbcast.lane.b32.xlu1 %v2708_v28, 281  ;;  %1141 = vbcast.lane.b32.xlu0 %v2708_v28, 273 }
0x165d   :  { %1185 = vbcast.lane.b32.xlu1 %v2693_v23, 297  ;;  %1181 = vbcast.lane.b32.xlu0 %v2693_v23, 289 }
0x1661   :  { %1269 = vbcast.lane.b32.xlu1 %v2693_v23, 266  ;;  %1265 = vbcast.lane.b32.xlu0 %v2693_v23, 258 }
0x1665   :  { %1277 = vbcast.lane.b32.xlu1 %v2693_v23, 282  ;;  %1273 = vbcast.lane.b32.xlu0 %v2693_v23, 274 }
0x1669   :  { %1193 = vbcast.lane.b32.xlu1 %v2693_v23, 313  ;;  %1109 = vbcast.lane.b32.xlu0 %v2693_v23, 312 }
0x166d   :  { %1066 = vbcast.lane.b32.xlu1 %v2708_v28, 296  ;;  %1062 = vbcast.lane.b32.xlu0 %v2708_v28, 288 }
0x1671   :  { %1149 = vbcast.lane.b32.xlu1 %v2708_v28, 289  ;;  %1105 = vbcast.lane.b32.xlu0 %v2693_v23, 304 }
0x1675   :  { %1189 = vbcast.lane.b32.xlu1 %v2693_v23, 305  ;;  %1153 = vbcast.lane.b32.xlu0 %v2708_v28, 297 }
0x1679   :  { %1237 = vbcast.lane.b32.xlu1 %v2708_v28, 266  ;;  %1233 = vbcast.lane.b32.xlu0 %v2708_v28, 258 }
0x167d   :  { %1245 = vbcast.lane.b32.xlu1 %v2708_v28, 282  ;;  %1241 = vbcast.lane.b32.xlu0 %v2708_v28, 274 }
0x1681   :  { %1285 = vbcast.lane.b32.xlu1 %v2693_v23, 298  ;;  %1281 = vbcast.lane.b32.xlu0 %v2693_v23, 290 }
0x1685   :  { %1161 = vbcast.lane.b32.xlu1 %v2708_v28, 313  ;;  %1074 = vbcast.lane.b32.xlu0 %v2708_v28, 312 }
0x1689   :  { %1070 = vbcast.lane.b32.xlu1 %v2708_v28, 304  ;;  %1293 = vbcast.lane.b32.xlu0 %v2693_v23, 314 }
0x168d   :  { %1249 = vbcast.lane.b32.xlu1 %v2708_v28, 290  ;;  %1157 = vbcast.lane.b32.xlu0 %v2708_v28, 305 }
0x1691   :  { %1289 = vbcast.lane.b32.xlu1 %v2693_v23, 306  ;;  %1253 = vbcast.lane.b32.xlu0 %v2708_v28, 298 }
0x1695   :  { %1257 = vbcast.lane.b32.xlu1 %v2708_v28, 306  ;;  %1261 = vbcast.lane.b32.xlu0 %v2708_v28, 314 }
0x16ab   :  { %v1086_v14 = vpop.permute.xlu1 %1085  ;;  %v1082_v15 = vpop.permute.xlu0 %1081 }
0x16ac   :  { %v1124_v23 = vmul.f32 %v2767_v21, %v1086_v14  ;;  %v1123_v29 = vmul.f32 %v2767_v21, %v1082_v15 }
0x16af   :  { %v1094_v17 = vpop.permute.xlu1 %1093  ;;  %v1090_v19 = vpop.permute.xlu0 %1089 }
0x16b0   :  { %v1126_v27 = vmul.f32 %v2767_v21, %v1094_v17  ;;  %v1125_v20 = vmul.f32 %v2767_v21, %v1090_v19 }
0x16b3   :  { %v1170_v25 = vpop.permute.xlu1 %1169  ;;  %v1166_v26 = vpop.permute.xlu0 %1165 }
0x16b4   :  { %v1208_v28 = vmul.f32 %v2771_v24, %v1170_v25  ;;  %v1207_v30 = vmul.f32 %v2771_v24, %v1166_v26 }
0x16b6   :  { %v1224_v31 = vadd.f32 %v1208_v28, %v1124_v23  ;;  %v1223_v32 = vadd.f32 %v1207_v30, %v1123_v29 }
0x16b7   :  { %v1178_v33 = vpop.permute.xlu1 %1177  ;;  %v1174_v34 = vpop.permute.xlu0 %1173 }
0x16b8   :  { %v1210_v22 = vmul.f32 %v2771_v24, %v1178_v33  ;;  %v1209_v35 = vmul.f32 %v2771_v24, %v1174_v34 }
0x16ba   :  { %v1226_v36 = vadd.f32 %v1210_v22, %v1126_v27  ;;  %v1225_v37 = vadd.f32 %v1209_v35, %v1125_v20 }
0x16bb   :  { %v1051_v38 = vpop.permute.xlu1 %1050  ;;  %v1047_v39 = vpop.permute.xlu0 %1046 }
0x16bc   :  { %v1116_v17 = vmul.f32 %v2767_v21, %v1051_v38  ;;  %v1115_v19 = vmul.f32 %v2767_v21, %v1047_v39 }
0x16bf   :  { %v1059_v40 = vpop.permute.xlu1 %1058  ;;  %v1055_v41 = vpop.permute.xlu0 %1054 }
0x16c0   :  { %v1118_v25 = vmul.f32 %v2767_v21, %v1059_v40  ;;  %v1117_v26 = vmul.f32 %v2767_v21, %v1055_v41 }
0x16c3   :  { %v2781_v42 = vpop.permute.xlu1 %1101  ;;  %v2783_v43 = vpop.permute.xlu0 %1097 }
0x16c7   :  { %v1138_v44 = vpop.permute.xlu1 %1137  ;;  %v1134_v45 = vpop.permute.xlu0 %1133 }
0x16c8   :  { %v1200_v11 = vmul.f32 %v2771_v24, %v1138_v44  ;;  %v1199_v12 = vmul.f32 %v2771_v24, %v1134_v45 }
0x16ca   :  { %v1216_v28 = vadd.f32 %v1200_v11, %v1116_v17  ;;  %v1215_v30 = vadd.f32 %v1199_v12, %v1115_v19 }
0x16cb   :  { %v1146_v46 = vpop.permute.xlu1 %1145  ;;  %v1142_v47 = vpop.permute.xlu0 %1141 }
0x16cc   :  { %v1202_v15 = vmul.f32 %v2771_v24, %v1146_v46  ;;  %v1201_v16 = vmul.f32 %v2771_v24, %v1142_v47 }
0x16ce   :  { %v1218_v33 = vadd.f32 %v1202_v15, %v1118_v25  ;;  %v1217_v34 = vadd.f32 %v1201_v16, %v1117_v26 }
0x16cf   :  { %v1186_v49 = vpop.permute.xlu1 %1185  ;;  %v1182_v50 = vpop.permute.xlu0 %1181 }
0x16d0   :  { %v1212_v48 = vmul.f32 %v2771_v24, %v1186_v49 }
0x16d3   :  { %v1270_v52 = vpop.permute.xlu1 %1269  ;;  %v1266_v53 = vpop.permute.xlu0 %1265 }
0x16d4   :  { %v1308_v54 = vmul.f32 %v2786_v51, %v1270_v52  ;;  %v1307_v55 = vmul.f32 %v2786_v51, %v1266_v53 }
0x16d6   :  { %v2792_v60 = vadd.f32 %v1308_v54, %v1224_v31  ;;  %v2794_v61 = vadd.f32 %v1307_v55, %v1223_v32  ;;  %v1211_v54 = vmul.f32 %v2771_v24, %v1182_v50 }
0x16d7   :  { %v1278_v56 = vpop.permute.xlu1 %1277  ;;  %v1274_v57 = vpop.permute.xlu0 %1273 }
0x16d8   :  { %v1310_v58 = vmul.f32 %v2786_v51, %v1278_v56  ;;  %v1309_v59 = vmul.f32 %v2786_v51, %v1274_v57  ;;  %v1128_v56 = vmul.f32 %v2767_v21, %v2781_v42 }
0x16da   :  { %v2796_v18 = vadd.f32 %v1310_v58, %v1226_v36  ;;  %v2798_v62 = vadd.f32 %v1309_v59, %v1225_v37  ;;  %v1127_v58 = vmul.f32 %v2767_v21, %v2783_v43 }
0x16db   :  { %v1194_v63 = vpop.permute.xlu1 %1193  ;;  %v1110_v2 = vpop.permute.xlu0 %1109 }
0x16dc   :  { %v1347_v3 = vmax.f32 %v2792_v60, %v2796_v18  ;;  %v1346_v4 = vmax.f32 %v2794_v61, %v2798_v62  ;;  %v1214_v46 = vmul.f32 %v2771_v24, %v1194_v63  ;;  %v1130_v47 = vmul.f32 %v2767_v21, %v1110_v2  ;;  %v1560_v62 = vld [vmem:[#allocation5 + $0xb8] sm:$0xff] }
0x16dd   :  { %v1228_v2 = vadd.f32 %v1212_v48, %v1128_v56 }
0x16de   :  { %v1230_v59 = vadd.f32 %v1214_v46, %v1130_v47 }
0x16df   :  { %v1067_v5 = vpop.permute.xlu1 %1066  ;;  %v1063_v6 = vpop.permute.xlu0 %1062 }
0x16e0   :  { %v1119_v42 = vmul.f32 %v2767_v21, %v1063_v6  ;;  %v1120_v17 = vmul.f32 %v2767_v21, %v1067_v5 }
0x16e3   :  { %v1150_v8 = vpop.permute.xlu1 %1149  ;;  %v1106_v7 = vpop.permute.xlu0 %1105 }
0x16e4   :  { %v1203_v49 = vmul.f32 %v2771_v24, %v1150_v8  ;;  %v1129_v15 = vmul.f32 %v2767_v21, %v1106_v7 }
0x16e6   :  { %v1219_v8 = vadd.f32 %v1203_v49, %v1119_v42 }
0x16e7   :  { %v1190_v9 = vpop.permute.xlu1 %1189  ;;  %v1154_v10 = vpop.permute.xlu0 %1153 }
0x16e8   :  { %v1213_v11 = vmul.f32 %v2771_v24, %v1190_v9  ;;  %v1204_v16 = vmul.f32 %v2771_v24, %v1154_v10 }
0x16ea   :  { %v1229_v26 = vadd.f32 %v1213_v11, %v1129_v15  ;;  %v1220_v5 = vadd.f32 %v1204_v16, %v1120_v17  ;;  %v1565_v16 = vld [vmem:[#allocation5 + $0xe0] sm:$0xff] }
0x16eb   :  { %v1238_v13 = vpop.permute.xlu1 %1237  ;;  %v1234_v14 = vpop.permute.xlu0 %1233 }
0x16ec   :  { %v1300_v23 = vmul.f32 %v2786_v51, %v1238_v13  ;;  %v1299_v29 = vmul.f32 %v2786_v51, %v1234_v14  ;;  %v1227_v13 = vadd.f32 %v1211_v54, %v1127_v58 }
0x16ee   :  { %v2816_v22 = vadd.f32 %v1300_v23, %v1216_v28  ;;  %v2818_v35 = vadd.f32 %v1299_v29, %v1215_v30 }
0x16ef   :  { %v1246_v31 = vpop.permute.xlu1 %1245  ;;  %v1242_v32 = vpop.permute.xlu0 %1241 }
0x16f0   :  { %v1302_v27 = vmul.f32 %v2786_v51, %v1246_v31  ;;  %v1301_v20 = vmul.f32 %v2786_v51, %v1242_v32 }
0x16f2   :  { %v2820_v36 = vadd.f32 %v1302_v27, %v1218_v33  ;;  %v2822_v37 = vadd.f32 %v1301_v20, %v1217_v34 }
0x16f3   :  { %v1286_v38 = vpop.permute.xlu1 %1285  ;;  %v1282_v39 = vpop.permute.xlu0 %1281 }
0x16f4   :  { %v1332_v40 = vmax.f32 %v2816_v22, %v2820_v36  ;;  %v1331_v41 = vmax.f32 %v2818_v35, %v2822_v37  ;;  %v1312_v57 = vmul.f32 %v2786_v51, %v1286_v38  ;;  %v1311_v63 = vmul.f32 %v2786_v51, %v1282_v39 }
0x16f6   :  { %v1328_v43 = vadd.f32 %v1312_v57, %v1228_v2  ;;  %v1327_v19 = vadd.f32 %v1311_v63, %v1227_v13 }
0x16f7   :  { %v1162_v44 = vpop.permute.xlu1 %1161  ;;  %v1075_v45 = vpop.permute.xlu0 %1074 }
0x16f8   :  { %v1206_v9 = vmul.f32 %v2771_v24, %v1162_v44  ;;  %v1122_v23 = vmul.f32 %v2767_v21, %v1075_v45  ;;  %v1349_v31 = vmax.f32 %v1347_v3, %v1328_v43  ;;  %v1348_v32 = vmax.f32 %v1346_v4, %v1327_v19  ;;  %v1869_v3 = vld [vmem:[#allocation5 + $0xb0] ss:$0 sm:$0xff]  ;;  %v1561_v4 = vld [vmem:[#allocation5 + $0xc0] sm:$0xff] }
0x16f9   :  { %v2330_v2 = vpack.c.bf16 %v1561_v4, %v1560_v62 }
0x16fa   :  { %v1222_v20 = vadd.f32 %v1206_v9, %v1122_v23  ;;  %v1567_v9 = vld [vmem:[#allocation5 + $0xf0] sm:$0xff]  ;;  %v1866_v23 = vld [vmem:[#allocation5 + $0x40] ss:$0 sm:$0xff] }
0x16fb   :  { %v1071_v52 = vpop.permute.xlu1 %1070  ;;  %v1294_v53 = vpop.permute.xlu0 %1293 }
0x16fc   :  { %v1314_v55 = vmul.f32 %v2786_v51, %v1294_v53  ;;  %v1121_v33 = vmul.f32 %v2767_v21, %v1071_v52  ;;  %v1868_v53 = vld [vmem:[#allocation5 + $0x68] ss:$0 sm:$0xff] }
0x16fe   :  { %v1330_v14 = vadd.f32 %v1314_v55, %v1230_v59 }
0x16ff   :  { %v1250_v12 = vpop.permute.xlu1 %1249  ;;  %v1158_v50 = vpop.permute.xlu0 %1157 }
0x1700   :  { %v1303_v25 = vmul.f32 %v2786_v51, %v1250_v12  ;;  %v1351_v6 = vsel %vm1336_vm5, %v1330_v14, -inf  ;;  %v1205_v7 = vmul.f32 %v2771_v24, %v1158_v50  ;;  %v1562_v12 = vld [vmem:[#allocation5 + $0xc8] sm:$0xff]  ;;  %v1563_v50 = vld [vmem:[#allocation5 + $0xd0] sm:$0xff] }
0x1701   :  { %v1352_v35 = vmax.f32 %v1349_v31, %v1351_v6  ;;  %v2333_v22 = vpack.c.bf16 %v1563_v50, %v1562_v12 }
0x1702   :  { %v1319_v34 = vadd.f32 %v1303_v25, %v1219_v8  ;;  %v1221_v39 = vadd.f32 %v1205_v7, %v1121_v33  ;;  %v1568_v7 = vld [vmem:[#allocation5 + $0xf8] sm:$0xff]  ;;  %v1570_v33 = vld [vmem:[#allocation5 + $0x108] sm:$0xff] }
0x1703   :  { %v1290_v29 = vpop.permute.xlu1 %1289  ;;  %v1254_v28 = vpop.permute.xlu0 %1253 }
0x1704   :  { %v1313_v10 = vmul.f32 %v2786_v51, %v1290_v29  ;;  %v1304_v30 = vmul.f32 %v2786_v51, %v1254_v28  ;;  %v1333_v21 = vmax.f32 %v1331_v41, %v1319_v34  ;;  %v1571_v34 = vld [vmem:[#allocation5 + $0x110] sm:$0xff] }
0x1706   :  { %v1329_v27 = vadd.f32 %v1313_v10, %v1229_v26  ;;  %v1320_v24 = vadd.f32 %v1304_v30, %v1220_v5  ;;  %v1566_v26 = vld [vmem:[#allocation5 + $0xe8] sm:$0xff]  ;;  %v1569_v10 = vld [vmem:[#allocation5 + $0x100] sm:$0xff] }
0x1707   :  { %v1258_v37 = vpop.permute.xlu1 %1257  ;;  %v1262_v38 = vpop.permute.xlu0 %1261 }
0x1708   :  { %v1350_v44 = vmax.f32 %v1348_v32, %v1329_v27  ;;  %v1305_v45 = vmul.f32 %v2786_v51, %v1258_v37  ;;  %v1306_v60 = vmul.f32 %v2786_v51, %v1262_v38  ;;  %v1458_v18 = vpop.f32.mrb[6].mxu1  ;;  %v1334_v55 = vmax.f32 %v1332_v40, %v1320_v24  ;;  %v1564_v40 = vld [vmem:[#allocation5 + $0xd8] sm:$0xff]  ;;  %v1573_v38 = vld [vmem:[#allocation5 + $0x120] sm:$0xff] }
0x1709   :  { %v1463_v46 = vrot.slane %v1458_v18, 2  ;;  %v2086_v61 = vpop.f32.mrb[7].mxu1  ;;  %v2336_v25 = vpack.c.bf16 %v1565_v16, %v1564_v40  ;;  %v2342_v32 = vpack.c.bf16 %v1569_v10, %v1568_v7  ;;  %v2345_v24 = vpack.c.bf16 %v1571_v34, %v1570_v33  ;;  %v1572_v37 = vld [vmem:[#allocation5 + $0x118] sm:$0xff] }
0x170a   :  { %v1353_v47 = vmax.f32 %v1350_v44, %v1352_v35  ;;  %v1321_v48 = vadd.f32 %v1305_v45, %v1221_v39  ;;  %v1322_v52 = vadd.f32 %v1306_v60, %v1222_v20  ;;  %v1555_v54 = vpop.f32.mrb[12].mxu0  ;;  %v2348_v44 = vpack.c.bf16 %v1573_v38, %v1572_v37  ;;  %v1574_v45 = vld [vmem:[#allocation5 + $0x128] sm:$0xff]  ;;  %v1575_v60 = vld [vmem:[#allocation5 + $0x130] sm:$0xff] }
0x170b   :  { %v1465_v56 = vmax.f32 %v1458_v18, %v1463_v46  ;;  %v1556_v57 = vadd.f32 %v1869_v3, %v1555_v54  ;;  %v2105_v58 = vpop.f32.mrb[13].mxu0  ;;  %v2351_v18 = vpack.c.bf16 %v1575_v60, %v1574_v45 }
0x170c   :  { %v1354_v51 = vrot.slane %v1353_v47, 4  ;;  %v1335_v59 = vmax.f32 %v1333_v21, %v1321_v48  ;;  %v1337_v63 = vsel %vm1336_vm5, %v1322_v52, -inf  ;;  %v1871_v21 = vld [vmem:[#allocation5 + $0x238] ss:$0 sm:$0xff] }
0x170d   :  { %v1338_v49 = vmax.f32 %v1334_v55, %v1337_v63  ;;  %v1470_v11 = vadd.f32 %v1868_v53, %v1465_v56  ;;  %v1559_v41 = vmax.f32 %v1556_v57, 0.0 }
0x170e   :  { %v1355_v13 = vmax.f32 %v1353_v47, %v1354_v51 }
0x170f   :  { %v1339_v14 = vmax.f32 %v1335_v59, %v1338_v49  ;;  %v1471_v42 = vmax.f32 %v1470_v11, 0.0  ;;  %2139 = vmatmul.mubr.f32.vlgmr.msra.gmra.mrb[8].mxu1 %v1559_v41 }
0x1710   :  { %v1356_v15 = vrot.slane %v1355_v13, 2  ;;  %2331 = vmatpush3.bf16.msra.mxu1 %v2330_v2  ;;  %2208 = vmatprep.mubr.msk.f32.mxu1 %vm2505_vm0, %v2506_v1  ;;  %v2339_v1 = vpack.c.bf16 %v1567_v9, %v1566_v26 }
0x1711   :  { %v1340_v36 = vrot.slane %v1339_v14, 4  ;;  %2174 = vmatmul.mubr.f32.vlgmr.msra.gmra.mrb[14].mxu0 %v1471_v42  ;;  %2332 = vmatprep.subr.bf16.mxu1 %v2504_v0 }
0x1712   :  { %v1357_v43 = vmax.f32 %v1355_v13, %v1356_v15 }
0x1713   :  { %v1341_v17 = vmax.f32 %v1339_v14, %v1340_v36 }
0x1714   :  { %v1358_v19 = vrot.slane %v1357_v43, 1  ;;  %2334 = vmatpush3.bf16.msra.mxu1 %v2333_v22 }
0x1715   :  { %v1342_v8 = vrot.slane %v1341_v17, 2  ;;  %2335 = vmatprep.subr.bf16.mxu1 %v2504_v0 }
0x1716   :  { %v1359_v29 = vmax.f32 %v1357_v43, %v1358_v19 }
0x1717   :  { %v1343_v28 = vmax.f32 %v1341_v17, %v1342_v8 }
0x1718   :  { %2337 = vmatpush3.bf16.msra.mxu1 %v2336_v25  ;;  %v1365_v6 = vadd.f32 %v1866_v23, %v1359_v29 }
0x1719   :  { %2338 = vmatprep.subr.bf16.mxu1 %v2504_v0  ;;  %v1344_v30 = vrot.slane %v1343_v28, 1 }
0x171a   :  { %v1367_v31 = vmax.f32 %v1365_v6, 0.0 }
0x171b   :  { %v1345_v5 = vmax.f32 %v1343_v28, %v1344_v30 }
0x171c   :  { %2340 = vmatpush3.bf16.msra.mxu1 %v2339_v1  ;;  %v1751_v35 = vrot.slane %v1367_v31, 7 }
0x171d   :  { %2341 = vmatprep.subr.bf16.mxu1 %v2504_v0  ;;  %v1364_v27 = vadd.f32 %v1866_v23, %v1345_v5 }
0x171f   :  { %v1366_v20 = vmax.f32 %v1364_v27, 0.0 }
0x1720   :  { %2343 = vmatpush3.bf16.msra.mxu1 %v2342_v32 }
0x1721   :  { %2344 = vmatprep.subr.bf16.mxu1 %v2504_v0  ;;  %v1753_v39 = vsel %vm1752_vm6, %v1751_v35, %v1366_v20 }
0x1724   :  { %2346 = vmatpush3.bf16.msra.mxu1 %v2345_v24 }
0x1725   :  { %2347 = vmatprep.subr.bf16.mxu1 %v2504_v0 }
0x1728   :  { %2349 = vmatpush3.bf16.msra.mxu1 %v2348_v44 }
0x1729   :  { %2350 = vmatprep.subr.bf16.mxu1 %v2504_v0 }
0x172c   :  { %2352 = vmatpush3.bf16.msra.mxu1 %v2351_v18 }
0x172f   :  { %2209 = vmatmul.mubr.f32.vlgmr.msra.gmra.mrb[10].mxu1 %v1753_v39 }
0x17e2   :  { %v1675_v3 = vpop.f32.mrb[8].mxu1 }
0x17e3   :  { %v2140_v46 = vpop.f32.mrb[9].mxu1 }
0x17e4   :  { %v1745_v61 = vpop.f32.mrb[14].mxu0 }
0x17e5   :  { %v1746_v62 = vadd.f32 %v1745_v61, %v1675_v3  ;;  %v2175_v4 = vpop.f32.mrb[15].mxu0 }
0x1802   :  { %v1821_v47 = vpop.f32.mrb[10].mxu1 }
0x1803   :  { %v1825_v48 = vadd.f32 %v1821_v47, %v1746_v62  ;;  %v2210_v52 = vpop.f32.mrb[11].mxu1 }
0x1805   :  { %v1830_v53 = vadd.f32 %v1871_v21, %v1825_v48 }
0x1807   :  { %1831 = vst [vmem:[#allocation7] sm:$0x3] %v1830_v53 }
0x1808   :  { %2483 = shalt.err (!%p2480_p6)
}
0x1809   :  { %s2484_s12 = scalar_lea.hbm %s2888_s2, 32 }
0x180a   :  { %p2485_p7 = scmp.ne.s32.totalorder %s2888_s2, %s2484_s12  ;;  %p2488_p8 = scmp.lt.u32.totalorder %s2484_s12, %s2888_s2 }
0x180c   :  { %p2490_p9 = pnand %p2488_p8, %p2485_p7 }
0x180e   :  { %2493 = shalt.err (!%p2490_p9)
}
0x180f   :  { %1841 = dma.vmem_to_hbm [thread:$0]  %s1839_s8, 32, %s2888_s2, [#allocation4]  }
0x1810   :  { %2498 = dma.done.wait [#allocation4], 32  }
0x1811   :  { %2499 = vsyncadd [#allocation4], 4294967264 }
0x1812   :  { %1845 = vsyncpa [#allocation3], 1 }
0x1813   :  { %1846 = vsyncpa [#allocation6], 1 }
0x1814   :  { %1847 = vsyncpa [#allocation4], 1 }

</bundles_post_ra>
